<compile_context>
chip_gen: v7x
topology: tpu7x:2x2x1
jax: 0.10.0
libtpu: 0.0.40
codegen_flags: <defaults>
</compile_context>

<pallas_src>
import functools

import jax
import jax.numpy as jnp
from jax.experimental import pallas as pl
from jax.experimental.pallas import tpu as pltpu

EPS = 1e-6
NEG_SLOPE = 0.2


# ---------------------------------------------------------------------------
# Pallas kernel
# ---------------------------------------------------------------------------
def _vn_resnet_kernel(*refs, shortcut_mode, c_in):
    """One (batch, lane-tile) step of VNResnetBlockFC.

    Layout: every activation is [C, 3*nt] with the three vector components in
    adjacent nt-wide lane chunks, so each VNLinear is a single 2-D MXU matmul
    and the VNLeakyReLU reductions are VPU adds of lane chunks.
    """
    if shortcut_mode == "separate":
        (x0_ref, x1_ref, x2_ref, wd0_ref, w0_ref, wd1_ref, w1_ref, ws_ref,
         o0_ref, o1_ref, o2_ref) = refs
    else:
        (x0_ref, x1_ref, x2_ref, wd0_ref, w0_ref, wd1_ref, w1_ref,
         o0_ref, o1_ref, o2_ref) = refs
        ws_ref = None

    nt = x0_ref.shape[-1]
    w_dtype = wd0_ref.dtype                    # weights pre-cast in the wrapper

    def mm(w_ref, a):
        w = w_ref[...]
        if a.dtype != w.dtype:                 # activations cast at the MXU edge
            a = a.astype(w.dtype)
        return jnp.dot(w, a, preferred_element_type=jnp.float32)

    def vn_leaky_relu(f, d):
        # f, d: [C, 3*nt] f32.  Algebraically identical to the reference:
        #   out = f - [dot < 0] * (1 - slope) * dot / (|d|^2 + eps) * d
        dot = (f[:, :nt] * d[:, :nt]
               + f[:, nt:2 * nt] * d[:, nt:2 * nt]
               + f[:, 2 * nt:] * d[:, 2 * nt:])
        dsq = (d[:, :nt] * d[:, :nt]
               + d[:, nt:2 * nt] * d[:, nt:2 * nt]
               + d[:, 2 * nt:] * d[:, 2 * nt:])
        coef = jnp.where(dot >= 0.0, 0.0,
                         (1.0 - NEG_SLOPE) * dot / (dsq + EPS))   # exact f32
        coef3 = jnp.concatenate([coef, coef, coef], axis=-1)
        return f - coef3 * d

    # [C_in, 3*nt]: components side by side in the lane dim.  f32 copy for the
    # epilogue + (optionally) a single mm_dtype copy as the MXU operand.
    xc = jnp.concatenate([x0_ref[0], x1_ref[0], x2_ref[0]], axis=-1)
    xc = xc.astype(jnp.float32)
    x_mm = xc if xc.dtype == w_dtype else xc.astype(w_dtype)

    # Stage 0: direction map for actvn_0 (+ shortcut, stacked when aligned).
    if shortcut_mode == "stacked":
        t = mm(wd0_ref, x_mm)                  # [(C_in + C_out), 3*nt]
        d0 = t[:c_in]
        xs = t[c_in:]
    else:
        d0 = mm(wd0_ref, x_mm)                 # [C_in, 3*nt]
        xs = mm(ws_ref, x_mm) if shortcut_mode == "separate" else xc

    # net = fc_0(actvn_0(x)) ; dx = fc_1(actvn_1(net))
    a0 = vn_leaky_relu(xc, d0)
    net = mm(w0_ref, a0)                       # [C_h, 3*nt]
    d1 = mm(wd1_ref, net)
    a1 = vn_leaky_relu(net, d1)
    dx = mm(w1_ref, a1)                        # [C_out, 3*nt]

    # out = shortcut(x) + dx  -> three lane-dense [C_out, nt] stores.
    y = xs + dx
    o0_ref[0, :, :] = y[:, :nt].astype(o0_ref.dtype)
    o1_ref[0, :, :] = y[:, nt:2 * nt].astype(o1_ref.dtype)
    o2_ref[0, :, :] = y[:, 2 * nt:].astype(o2_ref.dtype)


# ---------------------------------------------------------------------------
# Wrapper (layout plumbing, tiling, BlockSpecs, (B, N-tiles) grid)
# ---------------------------------------------------------------------------
def vn_resnet_block_fc(x_pt, params, *, n_tile=256, mm_dtype=None):
    """VNResnetBlockFC forward.

    x_pt:    [B, C_in, 3, N] (PyTorch layout); returns [B, C_out, 3, N] with
             the same dtype as x_pt.
    params:  wd0 [C_in,C_in] (actvn_0.map_to_dir), w0 [C_h,C_in] (fc_0),
             wd1 [C_h,C_h] (actvn_1.map_to_dir), w1 [C_out,C_h] (fc_1),
             optional ws [C_out,C_in] (shortcut; omit when C_in == C_out).
    mm_dtype: optional MXU operand dtype for the VNLinear matmuls
             (jnp.bfloat16 recommended on v6e/v7x); reductions / epilogue
             always stay in f32.
    n_tile:  lane (sample) tile; ~256 on v7x, 512-1024 on v5e/v6e.
    """
    wd0, w0, wd1, w1 = params["wd0"], params["w0"], params["wd1"], params["w1"]
    ws = params.get("ws", None)

    B, c_in, V, N = x_pt.shape
    assert V == 3
    c_h = w0.shape[0]
    c_out = w1.shape[0]
    out_dtype = x_pt.dtype

    # ----- lane tile + padding so the grid never collapses ------------------
    n128 = ((N + 127) // 128) * 128
    nt = max(128, (min(n_tile, n128) // 128) * 128)
    nt = min(nt, n128)
    n_pad = ((N + nt - 1) // nt) * nt
    if n_pad != N:
        x_pt = jnp.pad(x_pt, ((0, 0), (0, 0), (0, 0), (0, n_pad - N)))
    n_blocks = n_pad // nt

    # Free, contiguous reshape: component k of channel c lives at lanes
    # [k*n_pad, (k+1)*n_pad) of row c.
    x2 = x_pt.reshape(B, c_in, 3 * n_pad)

    # ----- weights (plain [O, C]; cast once; optional stacked shortcut) -----
    w_dt = mm_dtype if mm_dtype is not None else jnp.float32
    if ws is None:
        assert c_in == c_out, "identity shortcut requires size_in == size_out"
        shortcut_mode = "identity"
        w_list = [wd0, w0, wd1, w1]
    elif c_in % 8 == 0:
        # One matmul against x produces both d0 and the shortcut (row split is
        # sublane-tile aligned).
        shortcut_mode = "stacked"
        w_list = [jnp.concatenate([wd0, ws], axis=0), w0, wd1, w1]
    else:
        shortcut_mode = "separate"
        w_list = [wd0, w0, wd1, w1, ws]
    w_list = [w.astype(w_dt) for w in w_list]

    # ----- BlockSpecs --------------------------------------------------------
    def _xspec(k):
        # Component k: lane-dense [C_in, nt] window into the same array.
        return pl.BlockSpec((1, c_in, nt),
                            lambda b, t, k=k: (b, 0, t + k * n_blocks))

    def _wspec(w):
        # Constant index_map -> weight DMA'd once, stays VMEM-resident.
        return pl.BlockSpec(w.shape, lambda b, t: (0, 0))

    in_specs = [_xspec(0), _xspec(1), _xspec(2)] + [_wspec(w) for w in w_list]
    out_specs = tuple(pl.BlockSpec((1, c_out, nt), lambda b, t: (b, 0, t))
                      for _ in range(3))
    out_shape = tuple(jax.ShapeDtypeStruct((B, c_out, n_pad), out_dtype)
                      for _ in range(3))

    # ----- conservative VMEM budget, capped for v7x (64 MiB physical) -------
    blk_in = 3 * c_in * nt * jnp.dtype(x_pt.dtype).itemsize
    blk_out = 3 * c_out * nt * jnp.dtype(out_dtype).itemsize
    w_bytes = sum(w.size * jnp.dtype(w.dtype).itemsize for w in w_list)
    live = 14 * 3 * max(c_in, c_h, c_out) * nt * 4     # live f32 intermediates
    vmem_limit = int(min(48 * 2**20,
                         max(32 * 2**20,
                             2 * (blk_in + blk_out) + 2 * w_bytes + live)))

    kernel = functools.partial(_vn_resnet_kernel,
                               shortcut_mode=shortcut_mode, c_in=c_in)

    o0, o1, o2 = pl.pallas_call(
        kernel,
        out_shape=out_shape,
        grid=(B, n_blocks),
        in_specs=in_specs,
        out_specs=out_specs,
        compiler_params=pltpu.CompilerParams(
            dimension_semantics=("parallel", "parallel"),
            vmem_limit_bytes=vmem_limit),
    )(x2, x2, x2, *w_list)

    # One cheap output-sized pass to re-interleave into the PyTorch layout.
    out = jnp.stack([o0, o1, o2], axis=2)              # [B, C_out, 3, n_pad]
    if n_pad != N:
        out = out[..., :N]
    return out


# ---------------------------------------------------------------------------
# Pure-JAX reference (mirrors the PyTorch module exactly), for validation.
# ---------------------------------------------------------------------------
_P_HI = jax.lax.Precision.HIGHEST


def _vn_linear_ref(x, w):
    return jnp.einsum("oc,bckn->bokn", w, x, precision=_P_HI)


def _vn_leaky_ref(x, wd):
    d = _vn_linear_ref(x, wd)
    dot = jnp.sum(x * d, axis=2, keepdims=True)
    mask = (dot >= 0).astype(x.dtype)
    dsq = jnp.sum(d * d, axis=2, keepdims=True)
    return NEG_SLOPE * x + (1.0 - NEG_SLOPE) * (
        mask * x + (1 - mask) * (x - dot / (dsq + EPS) * d))


def vn_resnet_block_fc_ref(x, params):
    net = _vn_linear_ref(_vn_leaky_ref(x, params["wd0"]), params["w0"])
    dx = _vn_linear_ref(_vn_leaky_ref(net, params["wd1"]), params["w1"])
    ws = params.get("ws", None)
    xs = _vn_linear_ref(x, ws) if ws is not None else x
    return xs + dx


# ---------------------------------------------------------------------------
if __name__ == "__main__":
    # Accurate f32 matmuls for the reference einsums (and for the in-kernel
    # dots if the kernel runs in interpret mode), so the comparison is fair.
    jax.config.update("jax_default_matmul_precision", "highest")

    key = jax.random.PRNGKey(0)
    kx, k0, k1, k2, k3, k4 = jax.random.split(key, 6)

    # --- 1) learned shortcut (size_in != size_out), tiled lane dim ----------
    B, size_in, size_h, size_out, N = 2, 8, 8, 16, 256
    x = jax.random.normal(kx, (B, size_in, 3, N), dtype=jnp.float32)
    params = {
        "wd0": 0.2 * jax.random.normal(k0, (size_in, size_in), jnp.float32),
        "w0":  0.2 * jax.random.normal(k1, (size_h, size_in), jnp.float32),
        "wd1": 0.2 * jax.random.normal(k2, (size_h, size_h), jnp.float32),
        "w1":  0.2 * jax.random.normal(k3, (size_out, size_h), jnp.float32),
        "ws":  0.2 * jax.random.normal(k4, (size_out, size_in), jnp.float32),
    }
    out = jax.block_until_ready(vn_resnet_block_fc(x, params, n_tile=128))
    ref = vn_resnet_block_fc_ref(x, params)
    assert out.shape == (B, size_out, 3, N) and out.dtype == x.dtype
    err = float(jnp.max(jnp.abs(out - ref)))
    assert err < 2e-3, "shortcut mismatch, max err = %e" % err

    # --- 2) identity shortcut (size_in == size_out) --------------------------
    params_id = {
        "wd0": params["wd0"], "w0": params["w0"], "wd1": params["wd1"],
        "w1": 0.2 * jax.random.normal(k3, (size_in, size_h), jnp.float32),
    }
    out_id = jax.block_until_ready(vn_resnet_block_fc(x, params_id, n_tile=128))
    ref_id = vn_resnet_block_fc_ref(x, params_id)
    err_id = float(jnp.max(jnp.abs(out_id - ref_id)))
    assert err_id < 2e-3, "identity mismatch, max err = %e" % err_id

    # --- 3) separate shortcut + ragged N (exercises the padding path) -------
    B3, ci3, ch3, co3, N3 = 1, 6, 6, 10, 200
    x3 = jax.random.normal(kx, (B3, ci3, 3, N3), dtype=jnp.float32)
    params3 = {
        "wd0": 0.2 * jax.random.normal(k0, (ci3, ci3), jnp.float32),
        "w0":  0.2 * jax.random.normal(k1, (ch3, ci3), jnp.float32),
        "wd1": 0.2 * jax.random.normal(k2, (ch3, ch3), jnp.float32),
        "w1":  0.2 * jax.random.normal(k3, (co3, ch3), jnp.float32),
        "ws":  0.2 * jax.random.normal(k4, (co3, ci3), jnp.float32),
    }
    out3 = jax.block_until_ready(vn_resnet_block_fc(x3, params3))
    ref3 = vn_resnet_block_fc_ref(x3, params3)
    assert out3.shape == (B3, co3, 3, N3)
    err3 = float(jnp.max(jnp.abs(out3 - ref3)))
    assert err3 < 2e-3, "padded/separate mismatch, max err = %e" % err3

    # --- 4) bf16 MXU-operand fast path (v6e/v7x): loose smoke check ---------
    out_bf = jax.block_until_ready(
        vn_resnet_block_fc(x, params, n_tile=128, mm_dtype=jnp.bfloat16))
    assert out_bf.shape == (B, size_out, 3, N) and out_bf.dtype == x.dtype
    assert bool(jnp.all(jnp.isfinite(out_bf)))
    err_bf = float(jnp.max(jnp.abs(out_bf - ref)))
    assert err_bf < 2e-1, "bf16 smoke mismatch, max err = %e" % err_bf

    print("KERNEL_OK")
</pallas_src>

<mosaic_0001>
module attributes {stable_mosaic.version = 11 : i64} {
  func.func @_vn_resnet_kernel(%arg0: i32, %arg1: i32, %arg2: memref<1x8x128xf32, #tpu.memory_space<vmem>>, %arg3: memref<1x8x128xf32, #tpu.memory_space<vmem>>, %arg4: memref<1x8x128xf32, #tpu.memory_space<vmem>>, %arg5: memref<24x8xf32, #tpu.memory_space<vmem>>, %arg6: memref<8x8xf32, #tpu.memory_space<vmem>>, %arg7: memref<8x8xf32, #tpu.memory_space<vmem>>, %arg8: memref<16x8xf32, #tpu.memory_space<vmem>>, %arg9: memref<1x16x128xf32, #tpu.memory_space<vmem>>, %arg10: memref<1x16x128xf32, #tpu.memory_space<vmem>>, %arg11: memref<1x16x128xf32, #tpu.memory_space<vmem>>) attributes {dimension_semantics = [#tpu.dimension_semantics<parallel>, #tpu.dimension_semantics<parallel>], iteration_bounds = array<i64: 2, 2>, scalar_prefetch = 0 : i64, scratch_operands = 0 : i64, tpu.core_type = #tpu.core_type<tc>, window_params = [{transform_indices = @transform_0, window_bounds = array<i64: 1, 8, 128>}, {transform_indices = @transform_1, window_bounds = array<i64: 1, 8, 128>}, {transform_indices = @transform_2, window_bounds = array<i64: 1, 8, 128>}, {pipeline_mode = #tpu.pipeline_mode<synchronous>, transform_indices = @transform_3, window_bounds = array<i64: 24, 8>}, {pipeline_mode = #tpu.pipeline_mode<synchronous>, transform_indices = @transform_4, window_bounds = array<i64: 8, 8>}, {pipeline_mode = #tpu.pipeline_mode<synchronous>, transform_indices = @transform_5, window_bounds = array<i64: 8, 8>}, {pipeline_mode = #tpu.pipeline_mode<synchronous>, transform_indices = @transform_6, window_bounds = array<i64: 16, 8>}, {transform_indices = @transform_7, window_bounds = array<i64: 1, 16, 128>}, {transform_indices = @transform_8, window_bounds = array<i64: 1, 16, 128>}, {transform_indices = @transform_9, window_bounds = array<i64: 1, 16, 128>}]} {
    %c0 = arith.constant 0 : index
    %c0_0 = arith.constant 0 : index
    %c0_1 = arith.constant 0 : index
    %0 = vector.load %arg2[%c0, %c0_0, %c0_1] : memref<1x8x128xf32, #tpu.memory_space<vmem>>, vector<1x8x128xf32>
    %1 = vector.shape_cast %0 : vector<1x8x128xf32> to vector<8x128xf32>
    %c0_2 = arith.constant 0 : index
    %c0_3 = arith.constant 0 : index
    %c0_4 = arith.constant 0 : index
    %2 = vector.load %arg3[%c0_2, %c0_3, %c0_4] : memref<1x8x128xf32, #tpu.memory_space<vmem>>, vector<1x8x128xf32>
    %3 = vector.shape_cast %2 : vector<1x8x128xf32> to vector<8x128xf32>
    %c0_5 = arith.constant 0 : index
    %c0_6 = arith.constant 0 : index
    %c0_7 = arith.constant 0 : index
    %4 = vector.load %arg4[%c0_5, %c0_6, %c0_7] : memref<1x8x128xf32, #tpu.memory_space<vmem>>, vector<1x8x128xf32>
    %5 = vector.shape_cast %4 : vector<1x8x128xf32> to vector<8x128xf32>
    %6 = tpu.concatenate %1, %3, %5 in 1 : vector<8x128xf32>, vector<8x128xf32>, vector<8x128xf32> -> vector<8x384xf32>
    %c0_8 = arith.constant 0 : index
    %c0_9 = arith.constant 0 : index
    %7 = vector.load %arg5[%c0_8, %c0_9] : memref<24x8xf32, #tpu.memory_space<vmem>>, vector<24x8xf32>
    %cst = arith.constant dense<0.000000e+00> : vector<24x384xf32>
    %8 = tpu.matmul %7, %6, %cst {dimension_numbers = #tpu.dot_dimension_numbers<[1], [0], [0], [1], [0, 0, 1, 1], [], []>, precision = #tpu.contract_precision<fp32>} : vector<24x8xf32>, vector<8x384xf32>, vector<24x384xf32> -> vector<24x384xf32>
    %9 = vector.extract_strided_slice %8 {offsets = [0, 0], sizes = [8, 384], strides = [1, 1]} : vector<24x384xf32> to vector<8x384xf32>
    %10 = vector.extract_strided_slice %8 {offsets = [8, 0], sizes = [16, 384], strides = [1, 1]} : vector<24x384xf32> to vector<16x384xf32>
    %11 = vector.extract_strided_slice %6 {offsets = [0, 0], sizes = [8, 128], strides = [1, 1]} : vector<8x384xf32> to vector<8x128xf32>
    %12 = vector.extract_strided_slice %9 {offsets = [0, 0], sizes = [8, 128], strides = [1, 1]} : vector<8x384xf32> to vector<8x128xf32>
    %13 = arith.mulf %11, %12 : vector<8x128xf32>
    %14 = vector.extract_strided_slice %6 {offsets = [0, 128], sizes = [8, 128], strides = [1, 1]} : vector<8x384xf32> to vector<8x128xf32>
    %15 = vector.extract_strided_slice %9 {offsets = [0, 128], sizes = [8, 128], strides = [1, 1]} : vector<8x384xf32> to vector<8x128xf32>
    %16 = arith.mulf %14, %15 : vector<8x128xf32>
    %17 = arith.addf %13, %16 : vector<8x128xf32>
    %18 = vector.extract_strided_slice %6 {offsets = [0, 256], sizes = [8, 128], strides = [1, 1]} : vector<8x384xf32> to vector<8x128xf32>
    %19 = vector.extract_strided_slice %9 {offsets = [0, 256], sizes = [8, 128], strides = [1, 1]} : vector<8x384xf32> to vector<8x128xf32>
    %20 = arith.mulf %18, %19 : vector<8x128xf32>
    %21 = arith.addf %17, %20 : vector<8x128xf32>
    %22 = vector.extract_strided_slice %9 {offsets = [0, 0], sizes = [8, 128], strides = [1, 1]} : vector<8x384xf32> to vector<8x128xf32>
    %23 = vector.extract_strided_slice %9 {offsets = [0, 0], sizes = [8, 128], strides = [1, 1]} : vector<8x384xf32> to vector<8x128xf32>
    %24 = arith.mulf %22, %23 : vector<8x128xf32>
    %25 = vector.extract_strided_slice %9 {offsets = [0, 128], sizes = [8, 128], strides = [1, 1]} : vector<8x384xf32> to vector<8x128xf32>
    %26 = vector.extract_strided_slice %9 {offsets = [0, 128], sizes = [8, 128], strides = [1, 1]} : vector<8x384xf32> to vector<8x128xf32>
    %27 = arith.mulf %25, %26 : vector<8x128xf32>
    %28 = arith.addf %24, %27 : vector<8x128xf32>
    %29 = vector.extract_strided_slice %9 {offsets = [0, 256], sizes = [8, 128], strides = [1, 1]} : vector<8x384xf32> to vector<8x128xf32>
    %30 = vector.extract_strided_slice %9 {offsets = [0, 256], sizes = [8, 128], strides = [1, 1]} : vector<8x384xf32> to vector<8x128xf32>
    %31 = arith.mulf %29, %30 : vector<8x128xf32>
    %32 = arith.addf %28, %31 : vector<8x128xf32>
    %cst_10 = arith.constant 0.000000e+00 : f32
    %33 = vector.broadcast %cst_10 : f32 to vector<8x128xf32>
    %34 = arith.cmpf oge, %21, %33 : vector<8x128xf32>
    %cst_11 = arith.constant 8.000000e-01 : f32
    %35 = vector.broadcast %cst_11 : f32 to vector<8x128xf32>
    %36 = arith.mulf %35, %21 : vector<8x128xf32>
    %cst_12 = arith.constant 9.99999997E-7 : f32
    %37 = vector.broadcast %cst_12 : f32 to vector<8x128xf32>
    %38 = arith.addf %32, %37 : vector<8x128xf32>
    %39 = arith.divf %36, %38 : vector<8x128xf32>
    %cst_13 = arith.constant 0.000000e+00 : f32
    %40 = vector.broadcast %cst_13 : f32 to vector<8x128xf32>
    %41 = arith.select %34, %40, %39 : vector<8x128xi1>, vector<8x128xf32>
    %42 = tpu.concatenate %41, %41, %41 in 1 : vector<8x128xf32>, vector<8x128xf32>, vector<8x128xf32> -> vector<8x384xf32>
    %43 = arith.mulf %42, %9 : vector<8x384xf32>
    %44 = arith.subf %6, %43 : vector<8x384xf32>
    %c0_14 = arith.constant 0 : index
    %c0_15 = arith.constant 0 : index
    %45 = vector.load %arg6[%c0_14, %c0_15] : memref<8x8xf32, #tpu.memory_space<vmem>>, vector<8x8xf32>
    %cst_16 = arith.constant dense<0.000000e+00> : vector<8x384xf32>
    %46 = tpu.matmul %45, %44, %cst_16 {dimension_numbers = #tpu.dot_dimension_numbers<[1], [0], [0], [1], [0, 0, 1, 1], [], []>, precision = #tpu.contract_precision<fp32>} : vector<8x8xf32>, vector<8x384xf32>, vector<8x384xf32> -> vector<8x384xf32>
    %c0_17 = arith.constant 0 : index
    %c0_18 = arith.constant 0 : index
    %47 = vector.load %arg7[%c0_17, %c0_18] : memref<8x8xf32, #tpu.memory_space<vmem>>, vector<8x8xf32>
    %cst_19 = arith.constant dense<0.000000e+00> : vector<8x384xf32>
    %48 = tpu.matmul %47, %46, %cst_19 {dimension_numbers = #tpu.dot_dimension_numbers<[1], [0], [0], [1], [0, 0, 1, 1], [], []>, precision = #tpu.contract_precision<fp32>} : vector<8x8xf32>, vector<8x384xf32>, vector<8x384xf32> -> vector<8x384xf32>
    %49 = vector.extract_strided_slice %46 {offsets = [0, 0], sizes = [8, 128], strides = [1, 1]} : vector<8x384xf32> to vector<8x128xf32>
    %50 = vector.extract_strided_slice %48 {offsets = [0, 0], sizes = [8, 128], strides = [1, 1]} : vector<8x384xf32> to vector<8x128xf32>
    %51 = arith.mulf %49, %50 : vector<8x128xf32>
    %52 = vector.extract_strided_slice %46 {offsets = [0, 128], sizes = [8, 128], strides = [1, 1]} : vector<8x384xf32> to vector<8x128xf32>
    %53 = vector.extract_strided_slice %48 {offsets = [0, 128], sizes = [8, 128], strides = [1, 1]} : vector<8x384xf32> to vector<8x128xf32>
    %54 = arith.mulf %52, %53 : vector<8x128xf32>
    %55 = arith.addf %51, %54 : vector<8x128xf32>
    %56 = vector.extract_strided_slice %46 {offsets = [0, 256], sizes = [8, 128], strides = [1, 1]} : vector<8x384xf32> to vector<8x128xf32>
    %57 = vector.extract_strided_slice %48 {offsets = [0, 256], sizes = [8, 128], strides = [1, 1]} : vector<8x384xf32> to vector<8x128xf32>
    %58 = arith.mulf %56, %57 : vector<8x128xf32>
    %59 = arith.addf %55, %58 : vector<8x128xf32>
    %60 = vector.extract_strided_slice %48 {offsets = [0, 0], sizes = [8, 128], strides = [1, 1]} : vector<8x384xf32> to vector<8x128xf32>
    %61 = vector.extract_strided_slice %48 {offsets = [0, 0], sizes = [8, 128], strides = [1, 1]} : vector<8x384xf32> to vector<8x128xf32>
    %62 = arith.mulf %60, %61 : vector<8x128xf32>
    %63 = vector.extract_strided_slice %48 {offsets = [0, 128], sizes = [8, 128], strides = [1, 1]} : vector<8x384xf32> to vector<8x128xf32>
    %64 = vector.extract_strided_slice %48 {offsets = [0, 128], sizes = [8, 128], strides = [1, 1]} : vector<8x384xf32> to vector<8x128xf32>
    %65 = arith.mulf %63, %64 : vector<8x128xf32>
    %66 = arith.addf %62, %65 : vector<8x128xf32>
    %67 = vector.extract_strided_slice %48 {offsets = [0, 256], sizes = [8, 128], strides = [1, 1]} : vector<8x384xf32> to vector<8x128xf32>
    %68 = vector.extract_strided_slice %48 {offsets = [0, 256], sizes = [8, 128], strides = [1, 1]} : vector<8x384xf32> to vector<8x128xf32>
    %69 = arith.mulf %67, %68 : vector<8x128xf32>
    %70 = arith.addf %66, %69 : vector<8x128xf32>
    %cst_20 = arith.constant 0.000000e+00 : f32
    %71 = vector.broadcast %cst_20 : f32 to vector<8x128xf32>
    %72 = arith.cmpf oge, %59, %71 : vector<8x128xf32>
    %cst_21 = arith.constant 8.000000e-01 : f32
    %73 = vector.broadcast %cst_21 : f32 to vector<8x128xf32>
    %74 = arith.mulf %73, %59 : vector<8x128xf32>
    %cst_22 = arith.constant 9.99999997E-7 : f32
    %75 = vector.broadcast %cst_22 : f32 to vector<8x128xf32>
    %76 = arith.addf %70, %75 : vector<8x128xf32>
    %77 = arith.divf %74, %76 : vector<8x128xf32>
    %cst_23 = arith.constant 0.000000e+00 : f32
    %78 = vector.broadcast %cst_23 : f32 to vector<8x128xf32>
    %79 = arith.select %72, %78, %77 : vector<8x128xi1>, vector<8x128xf32>
    %80 = tpu.concatenate %79, %79, %79 in 1 : vector<8x128xf32>, vector<8x128xf32>, vector<8x128xf32> -> vector<8x384xf32>
    %81 = arith.mulf %80, %48 : vector<8x384xf32>
    %82 = arith.subf %46, %81 : vector<8x384xf32>
    %c0_24 = arith.constant 0 : index
    %c0_25 = arith.constant 0 : index
    %83 = vector.load %arg8[%c0_24, %c0_25] : memref<16x8xf32, #tpu.memory_space<vmem>>, vector<16x8xf32>
    %cst_26 = arith.constant dense<0.000000e+00> : vector<16x384xf32>
    %84 = tpu.matmul %83, %82, %cst_26 {dimension_numbers = #tpu.dot_dimension_numbers<[1], [0], [0], [1], [0, 0, 1, 1], [], []>, precision = #tpu.contract_precision<fp32>} : vector<16x8xf32>, vector<8x384xf32>, vector<16x384xf32> -> vector<16x384xf32>
    %85 = arith.addf %10, %84 : vector<16x384xf32>
    %86 = vector.extract_strided_slice %85 {offsets = [0, 0], sizes = [16, 128], strides = [1, 1]} : vector<16x384xf32> to vector<16x128xf32>
    %c0_27 = arith.constant 0 : index
    %c0_28 = arith.constant 0 : index
    %c0_29 = arith.constant 0 : index
    %87 = vector.load %arg9[%c0_27, %c0_28, %c0_29] : memref<1x16x128xf32, #tpu.memory_space<vmem>>, vector<1x16x128xf32>
    %88 = vector.shape_cast %87 : vector<1x16x128xf32> to vector<16x128xf32>
    %89 = vector.shape_cast %86 : vector<16x128xf32> to vector<1x16x128xf32>
    tpu.vector_store %arg9[%c0_27, %c0_28, %c0_29], %89 {strides = array<i32>} : memref<1x16x128xf32, #tpu.memory_space<vmem>>, vector<1x16x128xf32>,
    %90 = vector.extract_strided_slice %85 {offsets = [0, 128], sizes = [16, 128], strides = [1, 1]} : vector<16x384xf32> to vector<16x128xf32>
    %c0_30 = arith.constant 0 : index
    %c0_31 = arith.constant 0 : index
    %c0_32 = arith.constant 0 : index
    %91 = vector.load %arg10[%c0_30, %c0_31, %c0_32] : memref<1x16x128xf32, #tpu.memory_space<vmem>>, vector<1x16x128xf32>
    %92 = vector.shape_cast %91 : vector<1x16x128xf32> to vector<16x128xf32>
    %93 = vector.shape_cast %90 : vector<16x128xf32> to vector<1x16x128xf32>
    tpu.vector_store %arg10[%c0_30, %c0_31, %c0_32], %93 {strides = array<i32>} : memref<1x16x128xf32, #tpu.memory_space<vmem>>, vector<1x16x128xf32>,
    %94 = vector.extract_strided_slice %85 {offsets = [0, 256], sizes = [16, 128], strides = [1, 1]} : vector<16x384xf32> to vector<16x128xf32>
    %c0_33 = arith.constant 0 : index
    %c0_34 = arith.constant 0 : index
    %c0_35 = arith.constant 0 : index
    %95 = vector.load %arg11[%c0_33, %c0_34, %c0_35] : memref<1x16x128xf32, #tpu.memory_space<vmem>>, vector<1x16x128xf32>
    %96 = vector.shape_cast %95 : vector<1x16x128xf32> to vector<16x128xf32>
    %97 = vector.shape_cast %94 : vector<16x128xf32> to vector<1x16x128xf32>
    tpu.vector_store %arg11[%c0_33, %c0_34, %c0_35], %97 {strides = array<i32>} : memref<1x16x128xf32, #tpu.memory_space<vmem>>, vector<1x16x128xf32>,
    return
  }
  func.func @transform_0(%arg0: i32, %arg1: i32) -> (i32, i32, i32) {
    %c0_i32 = arith.constant 0 : i32
    %0 = arith.addi %arg1, %c0_i32 : i32
    %c0_i32_0 = arith.constant 0 : i32
    %c0_i32_1 = arith.constant 0 : i32
    return %arg0, %c0_i32_0, %0 : i32, i32, i32
  }
  func.func @transform_1(%arg0: i32, %arg1: i32) -> (i32, i32, i32) {
    %c2_i32 = arith.constant 2 : i32
    %0 = arith.addi %arg1, %c2_i32 : i32
    %c0_i32 = arith.constant 0 : i32
    %c0_i32_0 = arith.constant 0 : i32
    return %arg0, %c0_i32, %0 : i32, i32, i32
  }
  func.func @transform_2(%arg0: i32, %arg1: i32) -> (i32, i32, i32) {
    %c4_i32 = arith.constant 4 : i32
    %0 = arith.addi %arg1, %c4_i32 : i32
    %c0_i32 = arith.constant 0 : i32
    %c0_i32_0 = arith.constant 0 : i32
    return %arg0, %c0_i32, %0 : i32, i32, i32
  }
  func.func @transform_3(%arg0: i32, %arg1: i32) -> (i32, i32) {
    %c0_i32 = arith.constant 0 : i32
    %c0_i32_0 = arith.constant 0 : i32
    %c0_i32_1 = arith.constant 0 : i32
    return %c0_i32, %c0_i32_0 : i32, i32
  }
  func.func @transform_4(%arg0: i32, %arg1: i32) -> (i32, i32) {
    %c0_i32 = arith.constant 0 : i32
    %c0_i32_0 = arith.constant 0 : i32
    %c0_i32_1 = arith.constant 0 : i32
    return %c0_i32, %c0_i32_0 : i32, i32
  }
  func.func @transform_5(%arg0: i32, %arg1: i32) -> (i32, i32) {
    %c0_i32 = arith.constant 0 : i32
    %c0_i32_0 = arith.constant 0 : i32
    %c0_i32_1 = arith.constant 0 : i32
    return %c0_i32, %c0_i32_0 : i32, i32
  }
  func.func @transform_6(%arg0: i32, %arg1: i32) -> (i32, i32) {
    %c0_i32 = arith.constant 0 : i32
    %c0_i32_0 = arith.constant 0 : i32
    %c0_i32_1 = arith.constant 0 : i32
    return %c0_i32, %c0_i32_0 : i32, i32
  }
  func.func @transform_7(%arg0: i32, %arg1: i32) -> (i32, i32, i32) {
    %c0_i32 = arith.constant 0 : i32
    %c0_i32_0 = arith.constant 0 : i32
    return %arg0, %c0_i32, %arg1 : i32, i32, i32
  }
  func.func @transform_8(%arg0: i32, %arg1: i32) -> (i32, i32, i32) {
    %c0_i32 = arith.constant 0 : i32
    %c0_i32_0 = arith.constant 0 : i32
    return %arg0, %c0_i32, %arg1 : i32, i32, i32
  }
  func.func @transform_9(%arg0: i32, %arg1: i32) -> (i32, i32, i32) {
    %c0_i32 = arith.constant 0 : i32
    %c0_i32_0 = arith.constant 0 : i32
    return %arg0, %c0_i32, %arg1 : i32, i32, i32
  }
}

</mosaic_0001>

<bundles_post_ra>
// kernel: tpu_custom_call.1
= control target key start
LH: loop header
LB: loop body
LE: loop exit
PB: predicated region body
PF: predicated region fallthrough
CT: control target
= control target key end

     0   :  { %s6503_s0 = inlined_call_operand.hbm [shape: f32[2,8,768], index: 0, kind: input, shape index: {}]   ;;  %s6504_s1 = inlined_call_operand.hbm [shape: f32[2,8,768], index: 1, kind: input, shape index: {}]   ;;  %s6505_s2 = inlined_call_operand.hbm [shape: f32[2,8,768], index: 2, kind: input, shape index: {}]   ;;  %s6506_s3 = inlined_call_operand.vmem [shape: f32[24,8], index: 3, kind: input, shape index: {}]   ;;  %s6507_s4 = inlined_call_operand.vmem [shape: f32[8,8], index: 4, kind: input, shape index: {}]   ;;  %s6508_s5 = inlined_call_operand.vmem [shape: f32[8,8], index: 5, kind: input, shape index: {}]   ;;  %s6509_s6 = inlined_call_operand.vmem [shape: f32[16,8], index: 6, kind: input, shape index: {}]   ;;  %s6510_s7 = inlined_call_operand.hbm [shape: f32[2,16,256], index: 7, kind: output, shape index: {0}]   ;;  %s6511_s8 = inlined_call_operand.hbm [shape: f32[2,16,256], index: 8, kind: output, shape index: {1}]   ;;  %s6512_s9 = inlined_call_operand.hbm [shape: f32[2,16,256], index: 9, kind: output, shape index: {2}]  }
   0x1   :  { %6537 = sst [smem:[#allocation28_spill]] %s6503_s0 }
   0x2   :  { %6538 = sst [smem:[#allocation29_spill]] %s6504_s1 }
   0x3   :  { %6539 = sst [smem:[#allocation30_spill]] %s6505_s2 }
   0x4   :  { %6540 = sst [smem:[#allocation31_spill]] %s6506_s3 }
   0x5   :  { %6541 = sst [smem:[#allocation32_spill]] %s6507_s4 }
   0x6   :  { %6542 = sst [smem:[#allocation33_spill]] %s6508_s5 }
   0x7   :  { %6543 = sst [smem:[#allocation34_spill]] %s6509_s6 }
   0x8   :  { %6544 = sst [smem:[#allocation35_spill]] %s6510_s7 }
   0x9   :  { %6545 = sst [smem:[#allocation36_spill]] %s6511_s8 }
   0xa   :  { %6546 = sst [smem:[#allocation37_spill]] %s6512_s9 }
   0xb   :  { %15 = vsyncpa [#allocation3], 0 }
   0xc   :  { %17 = vsyncpa [#allocation3 + $0x1], 0 }
   0xd   :  { %18 = vsyncpa [#allocation6], 0 }
   0xe   :  { %20 = vsyncpa [#allocation6 + $0x1], 0 }
   0xf   :  { %21 = vsyncpa [#allocation4], 0 }
  0x10   :  { %23 = vsyncpa [#allocation4 + $0x1], 0 }
  0x11   :  { %24 = vsyncpa [#allocation10], 0 }
  0x12   :  { %26 = vsyncpa [#allocation10 + $0x1], 0  ;;  %s5653_s30 = smov 0   ;;  %s5655_s10 = smov 0  }
  0x13   :  { %s5657_s11 = smov 0   ;;  %s5659_s12 = smov 0  }
  0x14   :  { %s5661_s13 = smov 0   ;;  %s5663_s14 = smov 0  }
  0x15   :  { %s5665_s15 = smov 0   ;;  %s5667_s16 = smov 0  }
  0x16   :  { %s5669_s17 = smov 0   ;;  %s5671_s18 = smov 0  }
  0x17   :  { %s5673_s19 = smov 0   ;;  %s5675_s20 = smov 0  }
  0x18   :  { %s5677_s21 = smov 0   ;;  %s5679_s22 = smov 0  }
  0x19 LB: > { %6547 = sst [smem:[#allocation17_spill]] %s5566_s16  ;;  %s5724_s23 = sadd.s32 4294967295, %s5590_s22   ;;  %s5590_s22 = sphi %s5679_s22, %s32_s22   ;;  %s5586_s21 = sphi %s5677_s21, %s6607_s21   ;;  %s5582_s20 = sphi %s5675_s20, %s6615_s20   ;;  %s5578_s19 = sphi %s5673_s19, %s6605_s19   ;;  %s5574_s18 = sphi %s5671_s18, %s6604_s18   ;;  %s5570_s17 = sphi %s5669_s17, %s6603_s17   ;;  %s5566_s16 = sphi %s5667_s16, %s6602_s16   ;;  %s5562_s15 = sphi %s5665_s15, %s6614_s15   ;;  %s5558_s14 = sphi %s5663_s14, %s6613_s14   ;;  %s5554_s13 = sphi %s5661_s13, %s6612_s13   ;;  %s5550_s12 = sphi %s5659_s12, %s6611_s12   ;;  %s5546_s11 = sphi %s5657_s11, %s6610_s11   ;;  %s5542_s10 = sphi %s5655_s10, %s6609_s10   ;;  %s5538_s30 = sphi %s5653_s30, %s6608_s30  }
  0x1a   : > { %6548 = sst [smem:[#allocation18_spill]] %s5570_s17  ;;  %s41_s24 = sadd.s32 1, %s5582_s20 }
  0x1b   : > { %6549 = sst [smem:[#allocation19_spill]] %s5574_s18  ;;  %p42_p0 = scmp.ge.s32.totalorder %s41_s24, 2 }
  0x1c   : > { %6550 = sst [smem:[#allocation20_spill]] %s5578_s19  ;;  %s44_s25 = sadd.s32 1, %s5586_s21 }
  0x1d   : > { %6551 = sst [smem:[#allocation21_spill]] %s5582_s20  ;;  %p6523_p1 = scmp.eq.s32.totalorder %s5590_s22, 0 }
  0x1e   : > { %6552 = sst [smem:[#allocation22_spill]] %s5586_s21  ;;  %p6522_p2 = scmp.eq.s32.totalorder %s5724_s23, 0 }
  0x1f   : > { %s6617_s24 = smov (%p42_p0, %s41_s24), 0  ;;  %s6619_s25 = smov (!%p42_p0, %s44_s25), %s5586_s21 }
  0x20   : > { %6553 = sst [smem:[#allocation23_spill]] %s6617_s24  ;;  %s76_s26 = sadd.s32 2, %s5582_s20 }
  0x21   : > { %s77_s27 = sadd.s32 2, %s6617_s24  ;;  %p46_p3 = scmp.ge.s32.totalorder %s6619_s25, 2 }
  0x22   : > { %s79_s28 = ssub.s32 %s76_s26, %s77_s27  ;;  %s83_s29 = sadd.s32 1, %s5558_s14 }
  0x23   : > { %p90_p4 = scmp.ne.s32.totalorder %s5558_s14, %s5554_s13  ;;  %s6621_s25 = smov (%p46_p3, %s6619_s25), 0 }
  0x24   : > { %6554 = sst [smem:[#allocation24_spill]] %s6621_s25  ;;  %p96_p6 = scmp.ne.s32.totalorder %s5554_s13, %s5550_s12 }
  0x25   : > { %p5742_p5 = por %p90_p4, %p6523_p1  ;;  %s5750_s8 = ssub.s32 %s5586_s21, %s6621_s25 }
  0x26   : > { %s106_s26 = sadd.s32 4, %s5582_s20  ;;  %s80_s27 = sor.u32 %s79_s28, %s5750_s8 }
  0x27   : > { %p5756_p7 = por %p96_p6, %p6522_p2  ;;  %p81_p8 = scmp.eq.s32.totalorder %s80_s27, 0 }
  0x28   : > { %s107_s18 = sadd.s32 4, %s6617_s24  ;;  %p6521_p9 = scmp.lt.s32.totalorder %s5590_s22, 4 }
  0x29   : > { %s6556_s7 = scalar_select %p5756_p7, 1, 0 }
  0x2a   : > { %s109_s19 = ssub.s32 %s106_s26, %s107_s18  ;;  %s5128_s28 = smul.u32 6, %s5586_s21 }
  0x2b   : > { %6557 = sst [smem:[#allocation25_spill]] %s6556_s7  ;;  %s110_s12 = sor.u32 %s109_s19, %s5750_s8 }
  0x2c   : > { %s5762_s6 = scalar_select %p81_p8, %s5558_s14, %s83_s29  }
  0x2d   : > { %p5766_p10 = scmp.eq.s32.totalorder %s110_s12, 0  ;;  %s350_s5 = sand.u32 1, %s5590_s22  }
  0x2e   : > { %6558 = sst [smem:[#allocation26_spill]] %s5762_s6  ;;  %s352_s4 = sand.u32 1, %s5558_s14  }
  0x2f   : > { %s339_s3 = sadd.s32 %s5582_s20, %s5128_s28  ;;  %s4750_s18 = sshll.u32 %s352_s4, 3 }
  0x30   : > { %s5774_s7 = sshll.u32 %s339_s3, 7  ;;  %s6560_s1 = sld [smem:[#allocation29_spill]] }
  0x31   : > { %s354_s19 = scalar_lea.vmem [#allocation5], %s4750_s18  ;;  %p5788_p11 = pnand %p6521_p9, %p5742_p5 }
  0x32   : > { %s364_s12 = sshll.u32 %s354_s19, 4  ;;  %s5794_s4 = scalar_lea.sflag [#allocation6], %s350_s5  ;;  %s5782_s12 = int_to_ptr.vmem [resolvable:$true] %s364_s12 }
  0x33   : > { %p5286_p3 = pneg %p5788_p11 }
  0x36   : > { %s4606_s29 = scalar_lea.hbm %s6560_s1, %s5774_s7  ;;  %s5289_s26 = scalar_lea.hbm %s6560_s1, 1536 }
  0x37   : > { %s5780_s6 = scalar_lea.hbm %s4606_s29, 256  ;;  %s5314_s28 = scalar_lea.hbm %s4606_s29, 384 }
  0x38   : > { %p5285_p0 = scmp.ne.s32.totalorder %s5780_s6, %s5314_s28  ;;  %p5290_p5 = scmp.lt.u32.totalorder %s5780_s6, %s6560_s1 }
  0x39   : > { %p5291_p8 = scmp.lt.u32.totalorder %s5289_s26, %s5314_s28  ;;  %p5293_p2 = scmp.lt.u32.totalorder %s5314_s28, %s5780_s6 }
  0x3a   : > { %p5287_p4 = pnand %p5286_p3, %p5285_p0 }
  0x3b   : > { %p5292_p9 = por %p5291_p8, %p5290_p5 }
  0x3c   : > { %p5288_p6 = pneg %p5287_p4 }
  0x3d   : > { %p5294_p1 = por %p5293_p2, %p5292_p9 }
  0x3f   : > { %p5295_p12 = pnand %p5294_p1, %p5288_p6 }
  0x41   : > { %5298 = shalt.err (!%p5295_p12)
}
  0x42   : > { %s5299_s5 = scalar_lea.vmem %s5782_s12, 128  ;;  %s5592_s29 = smov [#allocation5]  }
  0x43   : > { %p5300_p0 = scmp.ne.s32.totalorder %s5782_s12, %s5299_s5  ;;  %s5304_s9 = sshll.u32 %s5592_s29, 4  ;;  %s5305_s9 = int_to_ptr.vmem [resolvable:$false] %s5304_s9 }
  0x44   : > { %s5306_s18 = scalar_lea.vmem %s5305_s9, 256  ;;  %p5307_p7 = scmp.lt.s32.totalorder %s5782_s12, %s5305_s9 }
  0x45   : > { %p5302_p4 = pnand %p5300_p0, %p5286_p3  ;;  %p5308_p5 = scmp.lt.s32.totalorder %s5306_s18, %s5299_s5 }
  0x47   : > { %p5303_p13 = pneg %p5302_p4  ;;  %p5309_p8 = por %p5308_p5, %p5307_p7 }
  0x49   : > { %p5310_p2 = pnand %p5309_p8, %p5303_p13 }
  0x4b   : > { %5313 = shalt.err (!%p5310_p2)
}
  0x4c   : > { %5147 = dma.hbm_to_vmem [thread:$0]  (!%p5788_p11), %s5780_s6, 128, %s5782_s12, %s5794_s4  }
  0x4d   : > { %p6562_p1 = scmp.lt.s32.totalorder %s5590_s22, 5  ;;  %p6563_p7 = scmp.ge.s32.totalorder %s5590_s22, 1 }
  0x4e   : > { %s6525_s28 = sadd.s32 4294967294, %s5590_s22   ;;  %s49_s26 = ssub.s32 %s5582_s20, %s6617_s24 }
  0x4f   : > { %p5825_p9 = pnand %p6563_p7, %p6562_p1  ;;  %s50_s27 = sor.u32 %s49_s26, %s5750_s8 }
  0x50   : > { %s53_s19 = sadd.s32 1, %s5570_s17  ;;  %p51_p12 = scmp.eq.s32.totalorder %s50_s27, 0 }
  0x51   : > { %s6564_s3 = scalar_select %p5825_p9, 1, 0 }
  0x52   : > { %p60_p13 = scmp.ne.s32.totalorder %s5570_s17, %s5566_s16  ;;  %p66_p3 = scmp.ne.s32.totalorder %s5566_s16, %s5562_s15 }
  0x53   : > { %p236_p6 = scmp.eq.s32.totalorder %s5724_s23, 3  ;;  %p6566_p0 = scmp.eq.s32.totalorder %s5590_s22, 0 }
  0x54   : > { %s5840_s5 = scalar_select %p51_p12, %s5570_s17, %s53_s19  }
  0x55   : > { %p62_p11 = por %p6566_p0, %p60_p13  ;;  %p6567_p4 = scmp.eq.s32.totalorder %s5724_s23, 0 }
  0x56   : > { %6565 = sst [smem:[#allocation27_spill]] %s5840_s5  ;;  %p5850_p8 = por %p236_p6, %p60_p13 }
  0x57   : > { %p5846_p5 = por %p6567_p4, %p66_p3  ;;  %p242_p2 = scmp.eq.s32.totalorder %s6525_s28, 3 }
  0x58   : > { %s6569_s12 = scalar_select %p5850_p8, 1, 0 }
  0x59   : > { %s6568_s6 = scalar_select %p5846_p5, 1, 0 }
  0x5a   : > { %s330_s8 = sand.u32 1, %s5570_s17   ;;  %s6570_s0 = sld [smem:[#allocation28_spill]] }
  0x5b   : > { %p5863_p1 = por %p242_p2, %p66_p3  ;;  %s4748_s27 = sshll.u32 %s330_s8, 3 }
  0x5c   : > { %p6572_p7 = scmp.lt.s32.totalorder %s5590_s22, 4  ;;  %s334_s28 = scalar_lea.vmem [#allocation2], %s4748_s27 }
  0x5d   : > { %s6571_s26 = scalar_select %p5863_p1, 1, 0 }
  0x5e   : > { %p5869_p12 = pnand %p6572_p7, %p62_p11  ;;  %s343_s29 = sshll.u32 %s334_s28, 4  ;;  %s5873_s29 = int_to_ptr.vmem [resolvable:$true] %s343_s29 }
  0x5f   : > { %s331_s9 = scalar_lea.sflag [#allocation3], %s330_s8 }
  0x60   : > { %s5861_s18 = scalar_lea.hbm %s6570_s0, %s5774_s7  ;;  %p5317_p3 = pneg %p5869_p12 }
  0x61   : > { %s5315_s1 = scalar_lea.hbm %s5861_s18, 128  ;;  %s5320_s20 = scalar_lea.hbm %s6570_s0, 1536 }
  0x62   : > { %p5316_p13 = scmp.ne.s32.totalorder %s5861_s18, %s5315_s1  ;;  %p5321_p11 = scmp.lt.u32.totalorder %s5861_s18, %s6570_s0 }
  0x63   : > { %p5322_p4 = scmp.lt.u32.totalorder %s5320_s20, %s5315_s1  ;;  %p5324_p7 = scmp.lt.u32.totalorder %s5315_s1, %s5861_s18 }
  0x64   : > { %p5318_p6 = pnand %p5317_p3, %p5316_p13 }
  0x65   : > { %p5323_p2 = por %p5322_p4, %p5321_p11 }
  0x66   : > { %p5319_p0 = pneg %p5318_p6 }
  0x67   : > { %p5325_p1 = por %p5324_p7, %p5323_p2 }
  0x69   : > { %p5326_p8 = pnand %p5325_p1, %p5319_p0 }
  0x6b   : > { %5329 = shalt.err (!%p5326_p8)
}
  0x6c   : > { %s5330_s28 = scalar_lea.vmem %s5873_s29, 128  ;;  %s5593_s21 = smov [#allocation2]  }
  0x6d   : > { %p5331_p13 = scmp.ne.s32.totalorder %s5873_s29, %s5330_s28  ;;  %s5335_s24 = sshll.u32 %s5593_s21, 4  ;;  %s5336_s24 = int_to_ptr.vmem [resolvable:$false] %s5335_s24 }
  0x6e   : > { %s5337_s17 = scalar_lea.vmem %s5336_s24, 256  ;;  %p5338_p9 = scmp.lt.s32.totalorder %s5873_s29, %s5336_s24 }
  0x6f   : > { %p5333_p6 = pnand %p5331_p13, %p5317_p3  ;;  %p5339_p11 = scmp.lt.s32.totalorder %s5337_s17, %s5330_s28 }
  0x71   : > { %p5334_p5 = pneg %p5333_p6  ;;  %p5340_p4 = por %p5339_p11, %p5338_p9 }
  0x73   : > { %p5341_p2 = pnand %p5340_p4, %p5334_p5 }
  0x75   : > { %5344 = shalt.err (!%p5341_p2)
}
  0x76   : > { %5144 = dma.hbm_to_vmem [thread:$0]  (!%p5869_p12), %s5861_s18, 128, %s5873_s29, %s331_s9  }
  0x77   : > { %s113_s1 = sadd.s32 1, %s5546_s11  ;;  %p120_p9 = scmp.ne.s32.totalorder %s5546_s11, %s5542_s10 }
  0x78   : > { %s5906_s20 = scalar_select %p5766_p10, %s5546_s11, %s113_s1  }
  0x79   : > { %p6574_p5 = scmp.eq.s32.totalorder %s5590_s22, 0  ;;  %p126_p1 = scmp.ne.s32.totalorder %s5542_s10, %s5538_s30 }
  0x7a   : > { %s373_s5 = sand.u32 1, %s5546_s11   ;;  %s6575_s2 = sld [smem:[#allocation30_spill]] }
  0x7b   : > { %p122_p8 = por %p120_p9, %p6574_p5  ;;  %p6576_p3 = scmp.eq.s32.totalorder %s5724_s23, 0 }
  0x7c   : > { %s4752_s21 = sshll.u32 %s373_s5, 3  ;;  %p6578_p10 = scmp.lt.s32.totalorder %s5590_s22, 4 }
  0x7d   : > { %p5919_p0 = por %p126_p1, %p6576_p3  ;;  %s375_s25 = scalar_lea.vmem [#allocation7], %s4752_s21 }
  0x7e   : > { %s385_s29 = sshll.u32 %s375_s25, 4  ;;  %p5927_p12 = pnand %p6578_p10, %p122_p8  ;;  %s386_s29 = int_to_ptr.vmem [resolvable:$true] %s385_s29 }
  0x7f   : > { %s6577_s28 = scalar_select %p5919_p0, 1, 0 }
  0x80   : > { %s4614_s19 = scalar_lea.hbm %s6575_s2, %s5774_s7  ;;  %p5347_p13 = pneg %p5927_p12 }
  0x81   : > { %s5923_s18 = scalar_lea.hbm %s4614_s19, 512  ;;  %s5375_s7 = scalar_lea.hbm %s4614_s19, 640 }
  0x82   : > { %p5346_p7 = scmp.ne.s32.totalorder %s5923_s18, %s5375_s7  ;;  %s5350_s17 = scalar_lea.hbm %s6575_s2, 1536 }
  0x83   : > { %p5351_p4 = scmp.lt.u32.totalorder %s5923_s18, %s6575_s2  ;;  %p5352_p2 = scmp.lt.u32.totalorder %s5350_s17, %s5375_s7 }
  0x84   : > { %p5348_p6 = pnand %p5347_p13, %p5346_p7  ;;  %p5354_p5 = scmp.lt.u32.totalorder %s5375_s7, %s5923_s18 }
  0x85   : > { %p5353_p9 = por %p5352_p2, %p5351_p4 }
  0x86   : > { %p5349_p11 = pneg %p5348_p6 }
  0x87   : > { %p5355_p8 = por %p5354_p5, %p5353_p9 }
  0x89   : > { %p5356_p1 = pnand %p5355_p8, %p5349_p11 }
  0x8b   : > { %5359 = shalt.err (!%p5356_p1)
}
  0x8c   : > { %s5360_s8 = scalar_lea.vmem %s386_s29, 128  ;;  %s5594_s27 = smov [#allocation7]  }
  0x8d   : > { %p5361_p3 = scmp.ne.s32.totalorder %s386_s29, %s5360_s8  ;;  %s5365_s19 = sshll.u32 %s5594_s27, 4  ;;  %s5366_s19 = int_to_ptr.vmem [resolvable:$false] %s5365_s19 }
  0x8e   : > { %s5367_s21 = scalar_lea.vmem %s5366_s19, 256  ;;  %p5368_p6 = scmp.lt.s32.totalorder %s386_s29, %s5366_s19 }
  0x8f   : > { %p5363_p10 = pnand %p5361_p3, %p5347_p13  ;;  %p5369_p0 = scmp.lt.s32.totalorder %s5367_s21, %s5360_s8 }
  0x91   : > { %p5364_p7 = pneg %p5363_p10  ;;  %p5370_p2 = por %p5369_p0, %p5368_p6 }
  0x93   : > { %p5371_p4 = pnand %p5370_p2, %p5364_p7 }
  0x95   : > { %5374 = shalt.err (!%p5371_p4)
}
  0x96   : > { %5150 = dma.hbm_to_vmem [thread:$0]  (!%p5927_p12), %s5923_s18, 128, %s386_s29, %s5794_s4  }
  0x97   : > { %p6580_p11 = scmp.ne.s32.totalorder %s6564_s3, 0 }
  0x98   : > { %s5955_s25 = sand.u32 (!%p6580_p11), 1, %s5566_s16   ;;  %p6581_p0 = scmp.ne.s32.totalorder (!%p6580_p11), %s6568_s6, 0 }
  0x99   : > { %394 = sbr.rel (%p6580_p11) target bundleno = 1365 (0x555), region = 48  ;;  %s4755_s7 = sshll.u32 (!%p6580_p11), %s5955_s25, 3 }
  0x9a   : > { %s397_s9 = scalar_lea.sflag (!%p6580_p11), [#allocation3], %s5955_s25  ;;  %s400_s24 = scalar_lea.vmem (!%p6580_p11), [#allocation2], %s4755_s7 }
  0xa0   : > { %5517 = dma.done.wait (%p6581_p0), %s397_s9, 128  }
  0xa1   : > { %5519 = vsyncadd (%p6581_p0), %s397_s9, 4294967168  ;;  %s6582_s4 = sld [smem:[#allocation25_spill]]  ;;  %s6533_s3 = sand.u32 1, %s5724_s23  }
  0xa2   : > { %s407_s18 = sand.u32 1, %s5554_s13   ;;  %s406_s30 = scalar_lea.sflag [#allocation6], %s6533_s3 }
  0xa3   : > { %s4756_s29 = sshll.u32 %s407_s18, 3 }
  0xa4   : > { %s409_s17 = scalar_lea.vmem [#allocation5], %s4756_s29 }
  0xa7   : > { %p6583_p12 = scmp.ne.s32.totalorder %s6582_s4, 0 }
  0xa9   : > { %5521 = dma.done.wait (%p6583_p12), %s406_s30, 128  }
  0xaa   : > { %5523 = vsyncadd (%p6583_p12), %s406_s30, 4294967168  ;;  %s416_s1 = sand.u32 1, %s5542_s10   ;;  %p6584_p13 = scmp.ne.s32.totalorder %s6577_s28, 0 }
  0xab   : > { %s5972_s6 = sshll.u32 %s416_s1, 3 }
  0xac   : > { %s418_s5 = scalar_lea.vmem [#allocation7], %s5972_s6 }
  0xad   : > { %5525 = dma.done.wait (%p6584_p13), %s406_s30, 128  }
  0xae   : > { %5527 = vsyncadd (%p6584_p13), %s406_s30, 4294967168  ;;  %v5595_v0 = vmov 0.0   ;;  %vm481_vm0 = vcmask 64512   ;;  %v5981_v1 = vld [vmem:[%s409_s17] sm:$0xff]  ;;  %v5983_v2 = vld [vmem:[%s400_s24] sm:$0xff]  ;;  %s6585_s19 = sld [smem:[#allocation31_spill]] }
  0xaf   : > { %557 = vmatprep.mubr.f32.mxu1 %v5595_v0  ;;  %665 = vmatprep.mubr.f32.mxu0 %v5595_v0  ;;  %v5989_v4 = vand.u32 4294901760, %v5981_v1  ;;  %v5992_v5 = vand.u32 4294901760, %v5983_v2  ;;  %v6028_v21 = vld [vmem:[%s418_s5] sm:$0xff]  ;;  %vm5596_vm1 = vmmov 0   ;;  %s6587_s29 = sld [smem:[#allocation32_spill]]  ;;  %s6588_s1 = sld [smem:[#allocation33_spill]] }
  0xb0   : > { %v6045_v28 = vand.u32 4294901760, %v6028_v21  ;;  %s6589_s8 = sld [smem:[#allocation34_spill]]  ;;  %s6590_s28 = sld [smem:[#allocation20_spill]] }
  0xb1   : > { %492 = vmatprep.subr.mxu1 %v5989_v4  ;;  %v592_v12 = vsub.f32 %v5981_v1, %v5989_v4  ;;  %v6010_v13 = vsub.f32 %v5983_v2, %v5992_v5  ;;  %s6591_s21 = sld [smem:[#allocation19_spill]]  ;;  %s4758_s9 = sshll.u32 %s5955_s25, 4 }
  0xb2   : > { %494 = vmatpush1.msra.mxu1 %v5992_v5  ;;  %v6051_v33 = vsub.f32 %v6028_v21, %v6045_v28  ;;  %s458_s24 = scalar_lea.vmem [#allocation8], %s4758_s9  ;;  %s465_s30 = scalar_lea.vmem [#allocation9], %s4758_s9 }
  0xb3   : > { %v593_v17 = vand.u32 4294901760, %v592_v12  ;;  %v599_v18 = vand.u32 4294901760, %v6010_v13  ;;  %4838 = vmatprep.subr.mxu1 %v5595_v0  ;;  %s4508_s18 = sshll.u32 %s458_s24, 4  ;;  %s4525_s17 = sshll.u32 %s465_s30, 4  ;;  %s6342_s18 = int_to_ptr.vmem [resolvable:$true] %s4508_s18  ;;  %s6347_s17 = int_to_ptr.vmem [resolvable:$true] %s4525_s17 }
  0xb4   : > { %s6586_s7 = smov %s6585_s19  ;;  %v478_v3 = vld [vmem:[%s6585_s19] sm:$0xff]  ;;  %v1153_v36 = vand.u32 4294901760, %v6051_v33  ;;  %s6594_s2 = sld [smem:[#allocation37_spill]] }
  0xb5   : > { %v483_v6 = vsel %vm481_vm0, %v478_v3, 0  ;;  %v479_v7 = vld [vmem:[%s6586_s7 + $0x8] sm:$0xff]  ;;  %v480_v8 = vld [vmem:[%s6586_s7 + $0x10] sm:$0xff]  ;;  %v594_v23 = vsub.f32 %v592_v12, %v593_v17  ;;  %v600_v24 = vsub.f32 %v6010_v13, %v599_v18  ;;  %v1608_v60 = vld [vmem:[%s6587_s29] sm:$0xff]  ;;  %s4484_s27 = scalar_lea.sflag [#allocation4], %s5955_s25  ;;  %s5376_s19 = scalar_lea.vmem %s6342_s18, 256 }
  0xb6   : > { %v6001_v9 = vand.u32 4294901760, %v483_v6  ;;  %v486_v10 = vsel %vm481_vm0, %v479_v7, 0  ;;  %v489_v11 = vsel %vm481_vm0, %v480_v8, 0  ;;  %v1154_v38 = vsub.f32 %v6051_v33, %v1153_v36  ;;  %s4764_s4 = sshll.u32 %s6590_s28, 2  ;;  %s6592_s28 = sld [smem:[#allocation35_spill]] }
  0xb7   : > { %v6012_v14 = vand.u32 4294901760, %v486_v10  ;;  %v6014_v15 = vand.u32 4294901760, %v489_v11  ;;  %v595_v29 = vand.u32 4294901760, %v594_v23  ;;  %v601_v30 = vand.u32 4294901760, %v600_v24  ;;  %s4505_s29 = sadd.s32 %s6591_s21, %s4764_s4  ;;  %p5377_p9 = scmp.ne.s32.totalorder %s6342_s18, %s5376_s19 }
  0xb8   : > { %v6018_v16 = vsub.f32 %v483_v6, %v6001_v9  ;;  %v1155_v39 = vand.u32 4294901760, %v1154_v38  ;;  %s4765_s5 = sshll.u32 %s4505_s29, 7  ;;  %s6593_s29 = sld [smem:[#allocation36_spill]] }
  0xb9   : > { %v6022_v19 = vsub.f32 %v486_v10, %v6012_v14  ;;  %v6025_v20 = vsub.f32 %v489_v11, %v6014_v15  ;;  %596 = vmatprep.subr.mxu0 %v595_v29  ;;  %p6595_p5 = scmp.ne.s32.totalorder %s6569_s12, 0 }
  0xba   : > { %v6031_v22 = vand.u32 4294901760, %v6018_v16  ;;  %602 = vmatpush1.msra.mxu0 %v601_v30  ;;  %s6366_s7 = scalar_lea.hbm %s6594_s2, %s4765_s5 }
  0xbb   : > { %v6037_v25 = vand.u32 4294901760, %v6022_v19  ;;  %v6042_v27 = vand.u32 4294901760, %v6025_v20  ;;  %667 = vmatmul.mubr.f32.vlgmr.msra.gmra.mrb[0].mxu0 %v6001_v9  ;;  %689 = vmatprep.subr.mxu0 %v592_v12  ;;  %p5378_p8 = pnand %p5377_p9, %p6595_p5 }
  0xbc   : > { %v561_v26 = vsub.f32 %v6018_v16, %v6031_v22  ;;  %672 = vmatprep.mubr.f32.mxu0 %v5595_v0  ;;  %692 = vmatpush1.msra.mxu0 %v6010_v13  ;;  %s6353_s21 = scalar_lea.hbm %s6592_s28, %s4765_s5 }
  0xbd   : > { %v572_v31 = vsub.f32 %v6022_v19, %v6037_v25  ;;  %v583_v35 = vsub.f32 %v6025_v20, %v6042_v27  ;;  %781 = vmatprep.subr.mxu0 %v5989_v4  ;;  %p5379_p1 = pneg %p5378_p8 }
  0xbe   : > { %v562_v32 = vand.u32 4294901760, %v561_v26  ;;  %s6359_s3 = scalar_lea.hbm %s6593_s29, %s4765_s5 }
  0xbf   : > { %v573_v34 = vand.u32 4294901760, %v572_v31  ;;  %v584_v37 = vand.u32 4294901760, %v583_v35  ;;  %674 = vmatmul.mubr.f32.gmra.mrb[2].mxu0 %v6012_v14 }
  0xc0   : > { %563 = vmatmul.mubr.f32.vlgmr.msra.gmra.mrb[0].mxu1 %v562_v32  ;;  %679 = vmatprep.mubr.f32.mxu0 %v5595_v0 }
  0xc1   : > { %568 = vmatprep.mubr.f32.mxu1 %v5595_v0  ;;  %4839 = vmatpush3.msra.mxu1 %v6045_v28 }
  0xc2   : > { %4849 = vmatprep.subr.mxu1 %v5595_v0 }
  0xc3   : > { %681 = vmatmul.mubr.f32.gmra.mrb[4].mxu0 %v6014_v15 }
  0xc4   : > { %574 = vmatmul.mubr.f32.gmra.mrb[2].mxu1 %v573_v34  ;;  %755 = vmatprep.mubr.f32.mxu0 %v5595_v0 }
  0xc5   : > { %579 = vmatprep.mubr.f32.mxu1 %v5595_v0 }
  0xc7   : > { %758 = vmatmul.mubr.f32.vlgmr.msra.gmra.mrb[0].mxu0 %v6018_v16 }
  0xc8   : > { %585 = vmatmul.mubr.f32.gmra.mrb[4].mxu1 %v584_v37  ;;  %763 = vmatprep.mubr.f32.mxu0 %v5595_v0 }
  0xc9   : > { %4840 = vmatprep.mubr.msk.f32.mxu1 %vm5596_vm1, %v5595_v0  ;;  %783 = vmatpush1.msra.mxu0 %v5992_v5 }
  0xca   : > { %877 = vmatprep.subr.mxu0 %v593_v17 }
  0xcb   : > { %766 = vmatmul.mubr.f32.gmra.mrb[2].mxu0 %v6022_v19 }
  0xcc   : > { %4841 = vmatmul.mubr.f32.vlgmr.msra.gmra.mrb[6].mxu1 %v562_v32  ;;  %771 = vmatprep.mubr.f32.mxu0 %v5595_v0 }
  0xcd   : > { %4843 = vmatprep.mubr.msk.f32.mxu1 %vm5596_vm1, %v5595_v0  ;;  %4850 = vmatpush3.msra.mxu1 %v1155_v39 }
  0xce   : > { %4860 = vmatprep.subr.mxu1 %v5595_v0 }
  0xcf   : > { %774 = vmatmul.mubr.f32.gmra.mrb[4].mxu0 %v6025_v20 }
  0xd0   : > { %4844 = vmatmul.mubr.f32.gmra.mrb[8].mxu1 %v573_v34  ;;  %846 = vmatprep.mubr.f32.mxu0 %v5595_v0 }
  0xd1   : > { %4846 = vmatprep.mubr.msk.f32.mxu1 %vm5596_vm1, %v5595_v0 }
  0xd3   : > { %850 = vmatmul.mubr.f32.vlgmr.msra.gmra.mrb[0].mxu0 %v6031_v22 }
  0xd4   : > { %4847 = vmatmul.mubr.f32.gmra.mrb[10].mxu1 %v584_v37  ;;  %855 = vmatprep.mubr.f32.mxu0 %v5595_v0 }
  0xd5   : > { %4851 = vmatprep.mubr.msk.f32.mxu1 %vm5596_vm1, %v5595_v0  ;;  %881 = vmatpush1.msra.mxu0 %v599_v18 }
  0xd6   : > { %967 = vmatprep.subr.mxu0 %v5989_v4 }
  0xd7   : > { %859 = vmatmul.mubr.f32.gmra.mrb[2].mxu0 %v6037_v25 }
  0xd8   : > { %4852 = vmatmul.mubr.f32.vlgmr.msra.gmra.mrb[6].mxu1 %v6001_v9  ;;  %864 = vmatprep.mubr.f32.mxu0 %v5595_v0 }
  0xd9   : > { %4854 = vmatprep.mubr.msk.f32.mxu1 %vm5596_vm1, %v5595_v0  ;;  %4861 = vmatpush3.msra.mxu1 %v6051_v33 }
  0xda   : > { %4871 = vmatprep.subr.mxu1 %v5595_v0 }
  0xdb   : > { %868 = vmatmul.mubr.f32.gmra.mrb[4].mxu0 %v6042_v27 }
  0xdc   : > { %4855 = vmatmul.mubr.f32.gmra.mrb[8].mxu1 %v6012_v14  ;;  %944 = vmatprep.mubr.f32.mxu0 %v5595_v0 }
  0xdd   : > { %4857 = vmatprep.mubr.msk.f32.mxu1 %vm5596_vm1, %v5595_v0 }
  0xdf   : > { %946 = vmatmul.mubr.f32.vlgmr.msra.gmra.mrb[0].mxu0 %v6001_v9 }
  0xe0   : > { %4858 = vmatmul.mubr.f32.gmra.mrb[10].mxu1 %v6014_v15  ;;  %951 = vmatprep.mubr.f32.mxu0 %v5595_v0 }
  0xe1   : > { %4862 = vmatprep.mubr.msk.f32.mxu1 %vm5596_vm1, %v5595_v0  ;;  %969 = vmatpush1.msra.mxu0 %v5992_v5  ;;  %v1610_v5 = vsel %vm481_vm0, %v1608_v60, 0 }
  0xe2   : > { %v6182_v7 = vand.u32 4294901760, %v1610_v5 }
  0xe3   : > { %953 = vmatmul.mubr.f32.gmra.mrb[2].mxu0 %v6012_v14 }
  0xe4   : > { %4863 = vmatmul.mubr.f32.vlgmr.msra.gmra.mrb[6].mxu1 %v6018_v16  ;;  %958 = vmatprep.mubr.f32.mxu0 %v5595_v0 }
  0xe5   : > { %4865 = vmatprep.mubr.msk.f32.mxu1 %vm5596_vm1, %v5595_v0  ;;  %4872 = vmatpush3.msra.mxu1 %v6045_v28 }
  0xe6   : > { %4882 = vmatprep.subr.mxu1 %v5595_v0 }
  0xe7   : > { %960 = vmatmul.mubr.f32.gmra.mrb[4].mxu0 %v6014_v15 }
  0xe8   : > { %4866 = vmatmul.mubr.f32.gmra.mrb[8].mxu1 %v6022_v19  ;;  %1032 = vmatprep.mubr.f32.mxu0 %v5595_v0 }
  0xe9   : > { %4868 = vmatprep.mubr.msk.f32.mxu1 %vm5596_vm1, %v5595_v0 }
  0xeb   : > { %1034 = vmatmul.mubr.f32.vlgmr.msra.gmra.mrb[0].mxu0 %v6001_v9 }
  0xec   : > { %4869 = vmatmul.mubr.f32.gmra.mrb[10].mxu1 %v6025_v20  ;;  %1039 = vmatprep.mubr.f32.mxu0 %v5595_v0 }
  0xed   : > { %4873 = vmatprep.mubr.msk.f32.mxu1 %vm5596_vm1, %v5595_v0 }
  0xef   : > { %1041 = vmatmul.mubr.f32.gmra.mrb[2].mxu0 %v6012_v14 }
  0xf0   : > { %4874 = vmatmul.mubr.f32.vlgmr.msra.gmra.mrb[6].mxu1 %v6031_v22  ;;  %1046 = vmatprep.mubr.f32.mxu0 %v5595_v0 }
  0xf1   : > { %4876 = vmatprep.mubr.msk.f32.mxu1 %vm5596_vm1, %v5595_v0  ;;  %4883 = vmatpush3.msra.mxu1 %v1153_v36  ;;  %v2523_v36 = vld [vmem:[%s6588_s1] sm:$0xff]  ;;  %s472_s1 = scalar_lea.vmem [#allocation11], %s4758_s9 }
  0xf2   : > { %4893 = vmatprep.subr.mxu1 %v5595_v0  ;;  %v2525_v37 = vsel %vm481_vm0, %v2523_v36, 0  ;;  %s4542_s6 = sshll.u32 %s472_s1, 4  ;;  %s6361_s6 = int_to_ptr.vmem [resolvable:$true] %s4542_s6 }
  0xf3   : > { %1048 = vmatmul.mubr.f32.gmra.mrb[4].mxu0 %v6014_v15  ;;  %v6222_v38 = vand.u32 4294901760, %v2525_v37 }
  0xf4   : > { %4877 = vmatmul.mubr.f32.gmra.mrb[8].mxu1 %v6037_v25  ;;  %1678 = vmatprep.mubr.f32.mxu0 %v5595_v0 }
  0xf5   : > { %4879 = vmatprep.mubr.msk.f32.mxu1 %vm5596_vm1, %v5595_v0  ;;  %v2595_v39 = vsub.f32 %v2525_v37, %v6222_v38 }
  0xf8   : > { %4880 = vmatmul.mubr.f32.gmra.mrb[10].mxu1 %v6042_v27 }
  0xf9   : > { %4884 = vmatprep.mubr.msk.f32.mxu1 %vm5596_vm1, %v5595_v0 }
  0xfc   : > { %4885 = vmatmul.mubr.f32.vlgmr.msra.gmra.mrb[6].mxu1 %v6001_v9 }
  0xfd   : > { %4887 = vmatprep.mubr.msk.f32.mxu1 %vm5596_vm1, %v5595_v0  ;;  %4894 = vmatpush3.msra.mxu1 %v6045_v28 }
  0xfe   : > { %4904 = vmatprep.subr.mxu1 %v5595_v0 }
 0x100   : > { %4888 = vmatmul.mubr.f32.gmra.mrb[8].mxu1 %v6012_v14 }
 0x101   : > { %4890 = vmatprep.mubr.msk.f32.mxu1 %vm5596_vm1, %v5595_v0 }
 0x104   : > { %4891 = vmatmul.mubr.f32.gmra.mrb[10].mxu1 %v6014_v15 }
 0x105   : > { %4895 = vmatprep.mubr.msk.f32.mxu1 %vm5596_vm1, %v5595_v0 }
 0x108   : > { %4896 = vmatmul.mubr.f32.vlgmr.msra.gmra.mrb[6].mxu1 %v6001_v9  ;;  %v1680_v9 = vsub.f32 %v1610_v5, %v6182_v7 }
 0x109   : > { %4898 = vmatprep.mubr.msk.f32.mxu1 %vm5596_vm1, %v5595_v0 }
 0x10a   : > { %v1681_v11 = vand.u32 4294901760, %v1680_v9 }
 0x10c   : > { %4899 = vmatmul.mubr.f32.gmra.mrb[8].mxu1 %v6012_v14 }
 0x10d   : > { %4901 = vmatprep.mubr.msk.f32.mxu1 %vm5596_vm1, %v5595_v0 }
 0x110   : > { %4902 = vmatmul.mubr.f32.gmra.mrb[10].mxu1 %v6014_v15  ;;  %v1682_v15 = vsub.f32 %v1680_v9, %v1681_v11 }
 0x111   : > { %4906 = vmatprep.mubr.msk.f32.mxu1 %vm5596_vm1, %v5595_v0 }
 0x112   : > { %v1683_v23 = vand.u32 4294901760, %v1682_v15 }
 0x193   : > { %v564_v40 = vpop.f32.mrb[0].mxu1 }
 0x194   : > { %v566_v41 = vpop.f32.mrb[1].mxu1 }
 0x197   : > { %v6163_v42 = vpop.f32.mrb[2].mxu1 }
 0x198   : > { %v6165_v43 = vpop.f32.mrb[3].mxu1 }
 0x19b   : > { %v6167_v44 = vpop.f32.mrb[4].mxu1 }
 0x19c   : > { %v6169_v45 = vpop.f32.mrb[5].mxu1 }
 0x1be   : > { %v1035_v46 = vpop.f32.mrb[0].mxu0 }
 0x1bf   : > { %v4994_v47 = vadd.f32 %v1035_v46, %v564_v40  ;;  %v1037_v48 = vpop.f32.mrb[1].mxu0  ;;  %v2596_v40 = vand.u32 4294901760, %v2595_v39 }
 0x1c0   : > { %v4995_v49 = vadd.f32 %v1037_v48, %v566_v41 }
 0x1c1   : > { %v1586_v50 = vmul.f32 %v4994_v47, %v5983_v2  ;;  %v1591_v51 = vmul.f32 %v4994_v47, %v4994_v47  ;;  %v2597_v41 = vsub.f32 %v2595_v39, %v2596_v40 }
 0x1c2   : > { %v1587_v52 = vmul.f32 %v4995_v49, %v5981_v1  ;;  %v1592_v53 = vmul.f32 %v4995_v49, %v4995_v49 }
 0x1c4   : > { %v1588_v54 = vadd.f32 %v1587_v52, %v1586_v50  ;;  %v1593_v55 = vadd.f32 %v1592_v53, %v1591_v51 }
 0x1db   : > { %v1570_v56 = vpop.f32.mrb[6].mxu1 }
 0x1dc   : > { %v1589_v57 = vmul.f32 %v1570_v56, %v6028_v21  ;;  %v1594_v58 = vmul.f32 %v1570_v56, %v1570_v56  ;;  %v4897_v59 = vpop.f32.mrb[7].mxu1 }
 0x1de   : > { %v1590_v61 = vadd.f32 %v1589_v57, %v1588_v54  ;;  %v1595_v62 = vadd.f32 %v1594_v58, %v1593_v55 }
 0x1df   : > { %v6177_v63 = vpop.f32.mrb[8].mxu1 }
 0x1e0   : > { %v1598_v3 = vadd.f32 1e-06, %v1595_v62  ;;  %v4900_v4 = vpop.f32.mrb[9].mxu1  ;;  %v1597_v10 = vmul.f32 0.8, %v1590_v61  ;;  %vm1596_vm2 = vcmp.ge.f32.partialorder %v1590_v61, 0.0 }
 0x1e2   : > { %5280 = vrcp.f32 %v1598_v3 }
 0x1e3   : > { %v6180_v6 = vpop.f32.mrb[10].mxu1 }
 0x1e4   : > { %v4903_v8 = vpop.f32.mrb[11].mxu1 }
 0x1ec   : > { %v5281_v12 = vpop.eup %5280 }
 0x1ed   : > { %v1600_v13 = vmul.f32 %v5281_v12, %v1597_v10 }
 0x1ef   : > { %v1601_v14 = vsel %vm1596_vm2, 0.0, %v1600_v13 }
 0x1f0   : > { %v1602_v16 = vmul.f32 %v4994_v47, %v1601_v14  ;;  %v1603_v17 = vmul.f32 %v4995_v49, %v1601_v14  ;;  %v1604_v18 = vmul.f32 %v1601_v14, %v1570_v56  ;;  %v2598_v47 = vand.u32 4294901760, %v2597_v41 }
 0x1f2   : > { %v1607_v19 = vsub.f32 %v6028_v21, %v1604_v18  ;;  %v1606_v20 = vsub.f32 %v5981_v1, %v1603_v17  ;;  %v1605_v22 = vsub.f32 %v5983_v2, %v1602_v16 }
 0x1f4   : > { %v2078_v24 = vand.u32 4294901760, %v1607_v19  ;;  %v1612_v25 = vand.u32 4294901760, %v1606_v20  ;;  %v1614_v26 = vand.u32 4294901760, %v1605_v22 }
 0x1f6   : > { %v2155_v27 = vsub.f32 %v1607_v19, %v2078_v24  ;;  %1613 = vmatprep.subr.mxu0 %v1612_v25  ;;  %4905 = vmatpush3.msra.mxu1 %v2078_v24  ;;  %v1697_v28 = vsub.f32 %v1605_v22, %v1614_v26  ;;  %v1691_v29 = vsub.f32 %v1606_v20, %v1612_v25 }
 0x1f7   : > { %1615 = vmatpush1.msra.mxu0 %v1614_v26  ;;  %4907 = vmatmul.mubr.f32.vlgmr.msra.gmra.mrb[12].mxu1 %v1683_v23 }
 0x1f8   : > { %1684 = vmatmul.mubr.f32.vlgmr.msra.gmra.mrb[6].mxu0 %v1683_v23  ;;  %4909 = vmatprep.subr.mxu1 %v5595_v0  ;;  %v1692_v30 = vand.u32 4294901760, %v1691_v29  ;;  %v2156_v21 = vand.u32 4294901760, %v2155_v27  ;;  %v1698_v31 = vand.u32 4294901760, %v1697_v28 }
 0x1f9   : > { %4911 = vmatprep.mubr.msk.f32.mxu1 %vm5596_vm1, %v5595_v0  ;;  %1764 = vmatprep.mubr.f32.mxu0 %v5595_v0 }
 0x1fa   : > { %v1693_v1 = vsub.f32 %v1691_v29, %v1692_v30  ;;  %v2157_v2 = vsub.f32 %v2155_v27, %v2156_v21  ;;  %v1699_v32 = vsub.f32 %v1697_v28, %v1698_v31 }
 0x1fc   : > { %v1694_v33 = vand.u32 4294901760, %v1693_v1  ;;  %v2158_v34 = vand.u32 4294901760, %v2157_v2  ;;  %v1700_v35 = vand.u32 4294901760, %v1699_v32 }
 0x1fe   : > { %1695 = vmatprep.subr.mxu0 %v1694_v33  ;;  %4910 = vmatpush3.msra.mxu1 %v2158_v34 }
 0x1ff   : > { %1701 = vmatpush1.msra.mxu0 %v1700_v35  ;;  %4912 = vmatmul.mubr.f32.vlgmr.msra.gmra.mrb[12].mxu1 %v6182_v7 }
 0x200   : > { %4914 = vmatprep.subr.mxu1 %v5595_v0  ;;  %1766 = vmatmul.mubr.f32.vlgmr.msra.gmra.mrb[6].mxu0 %v6182_v7 }
 0x201   : > { %1774 = vmatprep.subr.mxu0 %v1691_v29  ;;  %4915 = vmatpush3.msra.mxu1 %v2155_v27  ;;  %v3461_v29 = vld [vmem:[%s6589_s8 + $0x8] sm:$0xff] }
 0x202   : > { %1777 = vmatpush1.msra.mxu0 %v1697_v28  ;;  %4916 = vmatprep.mubr.msk.f32.mxu1 %vm5596_vm1, %v5595_v0 }
 0x203   : > { %1850 = vmatprep.subr.mxu0 %v1612_v25  ;;  %4919 = vmatprep.subr.mxu1 %v5595_v0 }
 0x204   : > { %1840 = vmatprep.mubr.f32.mxu0 %v5595_v0 }
 0x207   : > { %4917 = vmatmul.mubr.f32.vlgmr.msra.gmra.mrb[12].mxu1 %v1680_v9 }
 0x208   : > { %4920 = vmatpush3.msra.mxu1 %v2078_v24  ;;  %1843 = vmatmul.mubr.f32.vlgmr.msra.gmra.mrb[6].mxu0 %v1680_v9 }
 0x209   : > { %1852 = vmatpush1.msra.mxu0 %v1614_v26  ;;  %4921 = vmatprep.mubr.msk.f32.mxu1 %vm5596_vm1, %v5595_v0 }
 0x20a   : > { %1928 = vmatprep.subr.mxu0 %v1692_v30  ;;  %4924 = vmatprep.subr.mxu1 %v5595_v0 }
 0x20b   : > { %1915 = vmatprep.mubr.f32.mxu0 %v5595_v0 }
 0x20f   : > { %4922 = vmatmul.mubr.f32.vlgmr.msra.gmra.mrb[12].mxu1 %v1681_v11 }
 0x210   : > { %4925 = vmatpush3.msra.mxu1 %v2156_v21  ;;  %1919 = vmatmul.mubr.f32.vlgmr.msra.gmra.mrb[6].mxu0 %v1681_v11  ;;  %v3466_v21 = vsel %vm481_vm0, %v3461_v29, 0 }
 0x211   : > { %1932 = vmatpush1.msra.mxu0 %v1698_v31  ;;  %4926 = vmatprep.mubr.msk.f32.mxu1 %vm5596_vm1, %v5595_v0  ;;  %v6285_v31 = vand.u32 4294901760, %v3466_v21 }
 0x212   : > { %2004 = vmatprep.subr.mxu0 %v1612_v25  ;;  %4929 = vmatprep.subr.mxu1 %v5595_v0 }
 0x213   : > { %1995 = vmatprep.mubr.f32.mxu0 %v5595_v0  ;;  %v6288_v1 = vsub.f32 %v3466_v21, %v6285_v31 }
 0x215   : > { %v6291_v33 = vand.u32 4294901760, %v6288_v1 }
 0x217   : > { %4927 = vmatmul.mubr.f32.vlgmr.msra.gmra.mrb[12].mxu1 %v6182_v7 }
 0x218   : > { %4930 = vmatpush3.msra.mxu1 %v2078_v24  ;;  %1997 = vmatmul.mubr.f32.vlgmr.msra.gmra.mrb[6].mxu0 %v6182_v7 }
 0x219   : > { %2006 = vmatpush1.msra.mxu0 %v1614_v26  ;;  %4931 = vmatprep.mubr.msk.f32.mxu1 %vm5596_vm1, %v5595_v0 }
 0x21a   : > { %2069 = vmatprep.mubr.f32.mxu0 %v5595_v0  ;;  %4934 = vmatprep.subr.mxu1 %v5595_v0 }
 0x21f   : > { %4932 = vmatmul.mubr.f32.vlgmr.msra.gmra.mrb[12].mxu1 %v6182_v7 }
 0x220   : > { %2071 = vmatmul.mubr.f32.vlgmr.msra.gmra.mrb[6].mxu0 %v6182_v7  ;;  %4936 = vmatprep.mubr.msk.f32.mxu1 %vm5596_vm1, %v5595_v0  ;;  %v3460_v7 = vld [vmem:[%s6589_s8] sm:$0xff]  ;;  %s5597_s8 = smov [#allocation8]  }
 0x221   : > { %2593 = vmatprep.mubr.f32.mxu0 %v5595_v0  ;;  %v3463_v8 = vsel %vm481_vm0, %v3460_v7, 0  ;;  %s5380_s16 = sshll.u32 %s5597_s8, 4  ;;  %s5381_s16 = int_to_ptr.vmem [resolvable:$false] %s5380_s16 }
 0x222   : > { %v6268_v9 = vand.u32 4294901760, %v3463_v8  ;;  %s5382_s9 = scalar_lea.vmem %s5381_s16, 512  ;;  %p5383_p3 = scmp.lt.s32.totalorder %s6342_s18, %s5381_s16 }
 0x223   : > { %p5384_p10 = scmp.lt.s32.totalorder %s5382_s9, %s5376_s19 }
 0x224   : > { %v6271_v10 = vsub.f32 %v3463_v8, %v6268_v9 }
 0x225   : > { %p5385_p7 = por %p5384_p10, %p5383_p3 }
 0x226   : > { %v6274_v11 = vand.u32 4294901760, %v6271_v10 }
 0x227   : > { %p5386_p6 = pnand %p5385_p7, %p5379_p1 }
 0x228   : > { %v3538_v12 = vsub.f32 %v6271_v10, %v6274_v11 }
 0x22a   : > { %v3539_v13 = vand.u32 4294901760, %v3538_v12 }
 0x2f2   : > { %v6225_v46 = vpop.f32.mrb[12].mxu1 }
 0x2f3   : > { %v2993_v48 = vand.u32 4294901760, %v6225_v46  ;;  %v6228_v49 = vpop.f32.mrb[6].mxu0  ;;  %v4933_v50 = vpop.f32.mrb[13].mxu1 }
 0x2f4   : > { %v2529_v51 = vand.u32 4294901760, %v6228_v49  ;;  %v6231_v52 = vpop.f32.mrb[7].mxu0 }
 0x2f5   : > { %v3070_v53 = vsub.f32 %v6225_v46, %v2993_v48  ;;  %v2527_v54 = vand.u32 4294901760, %v6231_v52  ;;  %4935 = vmatpush3.msra.mxu1 %v2993_v48 }
 0x2f6   : > { %v2612_v55 = vsub.f32 %v6228_v49, %v2529_v51  ;;  %4937 = vmatmul.mubr.f32.vlgmr.msra.gmra.mrb[14].mxu1 %v2598_v47  ;;  %4939 = vmatprep.subr.mxu1 %v5595_v0 }
 0x2f7   : > { %v2606_v56 = vsub.f32 %v6231_v52, %v2527_v54  ;;  %2528 = vmatprep.subr.mxu0 %v2527_v54  ;;  %v3071_v57 = vand.u32 4294901760, %v3070_v53  ;;  %4941 = vmatprep.mubr.msk.f32.mxu1 %vm5596_vm1, %v5595_v0 }
 0x2f8   : > { %2530 = vmatpush1.msra.mxu0 %v2529_v51  ;;  %v2613_v58 = vand.u32 4294901760, %v2612_v55 }
 0x2f9   : > { %2599 = vmatmul.mubr.f32.vlgmr.msra.gmra.mrb[8].mxu0 %v2598_v47  ;;  %v3072_v59 = vsub.f32 %v3070_v53, %v3071_v57  ;;  %v2607_v60 = vand.u32 4294901760, %v2606_v56 }
 0x2fa   : > { %v2614_v61 = vsub.f32 %v2612_v55, %v2613_v58  ;;  %2679 = vmatprep.mubr.f32.mxu0 %v5595_v0 }
 0x2fb   : > { %v3073_v62 = vand.u32 4294901760, %v3072_v59  ;;  %v2608_v3 = vsub.f32 %v2606_v56, %v2607_v60 }
 0x2fc   : > { %v2615_v5 = vand.u32 4294901760, %v2614_v61 }
 0x2fd   : > { %4940 = vmatpush3.msra.mxu1 %v3073_v62  ;;  %v2609_v4 = vand.u32 4294901760, %v2608_v3 }
 0x2fe   : > { %4942 = vmatmul.mubr.f32.vlgmr.msra.gmra.mrb[14].mxu1 %v6222_v38  ;;  %4944 = vmatprep.subr.mxu1 %v5595_v0 }
 0x2ff   : > { %2610 = vmatprep.subr.mxu0 %v2609_v4  ;;  %4945 = vmatpush3.msra.mxu1 %v3070_v53 }
 0x300   : > { %2616 = vmatpush1.msra.mxu0 %v2615_v5  ;;  %4946 = vmatprep.mubr.msk.f32.mxu1 %vm5596_vm1, %v5595_v0 }
 0x301   : > { %2681 = vmatmul.mubr.f32.vlgmr.msra.gmra.mrb[8].mxu0 %v6222_v38  ;;  %2689 = vmatprep.subr.mxu0 %v2606_v56 }
 0x302   : > { %2692 = vmatpush1.msra.mxu0 %v2612_v55  ;;  %4949 = vmatprep.subr.mxu1 %v5595_v0 }
 0x303   : > { %2765 = vmatprep.subr.mxu0 %v2527_v54  ;;  %2755 = vmatprep.mubr.f32.mxu0 %v5595_v0 }
 0x306   : > { %4947 = vmatmul.mubr.f32.vlgmr.msra.gmra.mrb[14].mxu1 %v2595_v39 }
 0x307   : > { %4950 = vmatpush3.msra.mxu1 %v2993_v48  ;;  %4951 = vmatprep.mubr.msk.f32.mxu1 %vm5596_vm1, %v5595_v0 }
 0x308   : > { %4954 = vmatprep.subr.mxu1 %v5595_v0 }
 0x309   : > { %2758 = vmatmul.mubr.f32.vlgmr.msra.gmra.mrb[8].mxu0 %v2595_v39  ;;  %v3549_v39 = vsub.f32 %v6288_v1, %v6291_v33 }
 0x30a   : > { %2767 = vmatpush1.msra.mxu0 %v2529_v51  ;;  %2830 = vmatprep.mubr.f32.mxu0 %v5595_v0 }
 0x30b   : > { %2843 = vmatprep.subr.mxu0 %v2607_v60  ;;  %v3550_v53 = vand.u32 4294901760, %v3549_v39 }
 0x30e   : > { %4952 = vmatmul.mubr.f32.vlgmr.msra.gmra.mrb[14].mxu1 %v2596_v40 }
 0x30f   : > { %4955 = vmatpush3.msra.mxu1 %v3071_v57  ;;  %4956 = vmatprep.mubr.msk.f32.mxu1 %vm5596_vm1, %v5595_v0 }
 0x310   : > { %4959 = vmatprep.subr.mxu1 %v5595_v0 }
 0x311   : > { %2834 = vmatmul.mubr.f32.vlgmr.msra.gmra.mrb[8].mxu0 %v2596_v40 }
 0x312   : > { %2847 = vmatpush1.msra.mxu0 %v2613_v58  ;;  %2910 = vmatprep.mubr.f32.mxu0 %v5595_v0 }
 0x313   : > { %2919 = vmatprep.subr.mxu0 %v2527_v54 }
 0x316   : > { %4957 = vmatmul.mubr.f32.vlgmr.msra.gmra.mrb[14].mxu1 %v6222_v38 }
 0x317   : > { %4960 = vmatpush3.msra.mxu1 %v2993_v48  ;;  %4961 = vmatprep.mubr.msk.f32.mxu1 %vm5596_vm1, %v5595_v0 }
 0x319   : > { %2912 = vmatmul.mubr.f32.vlgmr.msra.gmra.mrb[8].mxu0 %v6222_v38 }
 0x31a   : > { %2921 = vmatpush1.msra.mxu0 %v2529_v51  ;;  %2984 = vmatprep.mubr.f32.mxu0 %v5595_v0 }
 0x31e   : > { %4962 = vmatmul.mubr.f32.vlgmr.msra.gmra.mrb[14].mxu1 %v6222_v38 }
 0x31f   : > { %4966 = vmatprep.mubr.f32.mxu1 %v3539_v13 }
 0x321   : > { %2986 = vmatmul.mubr.f32.vlgmr.msra.gmra.mrb[8].mxu0 %v6222_v38 }
 0x322   : > { %3534 = vmatprep.mubr.f32.mxu0 %v5595_v0 }
 0x3f1   : > { %v3434_v14 = vpop.f32.mrb[14].mxu1 }
 0x3f2   : > { %v3441_v15 = vmul.f32 %v3434_v14, %v6225_v46  ;;  %v4963_v16 = vpop.f32.mrb[15].mxu1  ;;  %v3446_v24 = vmul.f32 %v3434_v14, %v3434_v14 }
 0x3f4   : > { %v2987_v17 = vpop.f32.mrb[8].mxu0 }
 0x3f5   : > { %v3438_v18 = vmul.f32 %v2987_v17, %v6228_v49  ;;  %v3443_v19 = vmul.f32 %v2987_v17, %v2987_v17  ;;  %v2989_v20 = vpop.f32.mrb[9].mxu0 }
 0x3f6   : > { %v3439_v22 = vmul.f32 %v2989_v20, %v6231_v52  ;;  %v3444_v23 = vmul.f32 %v2989_v20, %v2989_v20 }
 0x3f8   : > { %v3440_v25 = vadd.f32 %v3439_v22, %v3438_v18  ;;  %v3445_v26 = vadd.f32 %v3444_v23, %v3443_v19 }
 0x3fa   : > { %v3442_v27 = vadd.f32 %v3441_v15, %v3440_v25  ;;  %v3447_v28 = vadd.f32 %v3446_v24, %v3445_v26 }
 0x3fc   : > { %v3450_v30 = vadd.f32 1e-06, %v3447_v28  ;;  %v3449_v2 = vmul.f32 0.8, %v3442_v27  ;;  %vm3448_vm3 = vcmp.ge.f32.partialorder %v3442_v27, 0.0 }
 0x3fe   : > { %5282 = vrcp.f32 %v3450_v30 }
 0x408   : > { %v5283_v32 = vpop.eup %5282 }
 0x409   : > { %v3452_v34 = vmul.f32 %v5283_v32, %v3449_v2 }
 0x40b   : > { %v3453_v35 = vsel %vm3448_vm3, 0.0, %v3452_v34 }
 0x40c   : > { %v3454_v36 = vmul.f32 %v3453_v35, %v2987_v17  ;;  %v3455_v37 = vmul.f32 %v3453_v35, %v2989_v20  ;;  %v3456_v38 = vmul.f32 %v3453_v35, %v3434_v14 }
 0x40e   : > { %v3458_v40 = vsub.f32 %v6231_v52, %v3455_v37  ;;  %v3459_v41 = vsub.f32 %v6225_v46, %v3456_v38  ;;  %v3457_v47 = vsub.f32 %v6228_v49, %v3454_v36 }
 0x410   : > { %v3468_v48 = vand.u32 4294901760, %v3458_v40  ;;  %v6298_v50 = vand.u32 4294901760, %v3459_v41  ;;  %v3470_v51 = vand.u32 4294901760, %v3457_v47 }
 0x412   : > { %v3558_v54 = vsub.f32 %v3458_v40, %v3468_v48  ;;  %v4070_v55 = vsub.f32 %v3459_v41, %v6298_v50  ;;  %3469 = vmatprep.subr.mxu0 %v3468_v48  ;;  %4964 = vmatprep.subr.mxu1 %v6298_v50  ;;  %v3564_v56 = vsub.f32 %v3457_v47, %v3470_v51 }
 0x413   : > { %3471 = vmatpush1.msra.mxu0 %v3470_v51  ;;  %4965 = vmatpush3.msra.mxu1 %v6298_v50 }
 0x414   : > { %3540 = vmatmul.mubr.f32.vlgmr.msra.gmra.mrb[2].mxu0 %v3539_v13  ;;  %4967 = vmatmul.mubr.f32.vlgmr.msra.gmra.mrb[16].mxu1 %v3550_v53  ;;  %v3559_v46 = vand.u32 4294901760, %v3558_v54  ;;  %v4071_v52 = vand.u32 4294901760, %v4070_v55  ;;  %v3565_v49 = vand.u32 4294901760, %v3564_v56 }
 0x415   : > { %3545 = vmatprep.mubr.f32.mxu0 %v5595_v0  ;;  %4971 = vmatprep.mubr.f32.mxu1 %v6268_v9 }
 0x416   : > { %v3560_v57 = vsub.f32 %v3558_v54, %v3559_v46  ;;  %v4072_v58 = vsub.f32 %v4070_v55, %v4071_v52  ;;  %v3566_v59 = vsub.f32 %v3564_v56, %v3565_v49 }
 0x418   : > { %3551 = vmatmul.mubr.f32.gmra.mrb[4].mxu0 %v3550_v53  ;;  %v3561_v60 = vand.u32 4294901760, %v3560_v57  ;;  %v4073_v61 = vand.u32 4294901760, %v4072_v58  ;;  %v3567_v62 = vand.u32 4294901760, %v3566_v59 }
 0x419   : > { %3631 = vmatprep.mubr.f32.mxu0 %v5595_v0 }
 0x41a   : > { %3562 = vmatprep.subr.mxu0 %v3561_v60  ;;  %4969 = vmatprep.subr.mxu1 %v4073_v61 }
 0x41b   : > { %3568 = vmatpush1.msra.mxu0 %v3567_v62  ;;  %4970 = vmatpush3.msra.mxu1 %v4073_v61 }
 0x41c   : > { %3633 = vmatmul.mubr.f32.vlgmr.msra.gmra.mrb[2].mxu0 %v6268_v9  ;;  %3648 = vmatprep.subr.mxu0 %v3558_v54 }
 0x41d   : > { %4972 = vmatmul.mubr.f32.vlgmr.msra.gmra.mrb[16].mxu1 %v6285_v31  ;;  %4974 = vmatprep.subr.mxu1 %v4070_v55 }
 0x41e   : > { %3651 = vmatpush1.msra.mxu0 %v3564_v56  ;;  %4975 = vmatpush3.msra.mxu1 %v4070_v55 }
 0x41f   : > { %3732 = vmatprep.subr.mxu0 %v3468_v48  ;;  %4979 = vmatprep.subr.mxu1 %v6298_v50 }
 0x420   : > { %3638 = vmatprep.mubr.f32.mxu0 %v5595_v0  ;;  %4976 = vmatprep.mubr.f32.mxu1 %v6271_v10 }
 0x421   : > { %3640 = vmatmul.mubr.f32.gmra.mrb[4].mxu0 %v6285_v31 }
 0x422   : > { %3714 = vmatprep.mubr.f32.mxu0 %v5595_v0 }
 0x425   : > { %3717 = vmatmul.mubr.f32.vlgmr.msra.gmra.mrb[2].mxu0 %v6271_v10  ;;  %4977 = vmatmul.mubr.f32.vlgmr.msra.gmra.mrb[16].mxu1 %v6288_v1 }
 0x426   : > { %3734 = vmatpush1.msra.mxu0 %v3470_v51  ;;  %4980 = vmatpush3.msra.mxu1 %v6298_v50 }
 0x427   : > { %3819 = vmatprep.subr.mxu0 %v3559_v46  ;;  %4984 = vmatprep.subr.mxu1 %v4071_v52 }
 0x428   : > { %3722 = vmatprep.mubr.f32.mxu0 %v5595_v0  ;;  %4981 = vmatprep.mubr.f32.mxu1 %v6274_v11 }
 0x429   : > { %3725 = vmatmul.mubr.f32.gmra.mrb[4].mxu0 %v6288_v1 }
 0x42a   : > { %3797 = vmatprep.mubr.f32.mxu0 %v5595_v0 }
 0x42d   : > { %3801 = vmatmul.mubr.f32.vlgmr.msra.gmra.mrb[2].mxu0 %v6274_v11  ;;  %4982 = vmatmul.mubr.f32.vlgmr.msra.gmra.mrb[16].mxu1 %v6291_v33 }
 0x42e   : > { %3823 = vmatpush1.msra.mxu0 %v3565_v49  ;;  %4985 = vmatpush3.msra.mxu1 %v4071_v52 }
 0x42f   : > { %3902 = vmatprep.subr.mxu0 %v3468_v48  ;;  %4989 = vmatprep.subr.mxu1 %v6298_v50 }
 0x430   : > { %3806 = vmatprep.mubr.f32.mxu0 %v5595_v0  ;;  %4986 = vmatprep.mubr.f32.mxu1 %v6268_v9 }
 0x431   : > { %3810 = vmatmul.mubr.f32.gmra.mrb[4].mxu0 %v6291_v33 }
 0x432   : > { %3886 = vmatprep.mubr.f32.mxu0 %v5595_v0 }
 0x435   : > { %3888 = vmatmul.mubr.f32.vlgmr.msra.gmra.mrb[2].mxu0 %v6268_v9  ;;  %4987 = vmatmul.mubr.f32.vlgmr.msra.gmra.mrb[16].mxu1 %v6285_v31 }
 0x436   : > { %3904 = vmatpush1.msra.mxu0 %v3470_v51  ;;  %4990 = vmatpush3.msra.mxu1 %v6298_v50 }
 0x437   : > { %3893 = vmatprep.mubr.f32.mxu0 %v5595_v0  ;;  %4991 = vmatprep.mubr.f32.mxu1 %v6268_v9 }
 0x439   : > { %3895 = vmatmul.mubr.f32.gmra.mrb[4].mxu0 %v6285_v31 }
 0x43a   : > { %3967 = vmatprep.mubr.f32.mxu0 %v5595_v0 }
 0x43d   : > { %3969 = vmatmul.mubr.f32.vlgmr.msra.gmra.mrb[2].mxu0 %v6268_v9  ;;  %4992 = vmatmul.mubr.f32.vlgmr.msra.gmra.mrb[16].mxu1 %v6285_v31 }
 0x43e   : > { %3974 = vmatprep.mubr.f32.mxu0 %v5595_v0 }
 0x441   : > { %3976 = vmatmul.mubr.f32.gmra.mrb[4].mxu0 %v6285_v31 }
 0x510   : > { %v3970_v3 = vpop.f32.mrb[2].mxu0  ;;  %v4993_v4 = vpop.f32.mrb[16].mxu1 }
 0x511   : > { %v4996_v5 = vadd.f32 %v3970_v3, %v6163_v42  ;;  %v4476_v7 = vadd.f32 %v4993_v4, %v6180_v6  ;;  %v3972_v8 = vpop.f32.mrb[3].mxu0  ;;  %v4461_v9 = vpop.f32.mrb[17].mxu1 }
 0x512   : > { %v4997_v0 = vadd.f32 %v3972_v8, %v6165_v43  ;;  %v4473_v10 = vadd.f32 %v4461_v9, %v6177_v63 }
 0x513   : > { %4477 = vst [vmem:[%s458_s24] sm:$0xff] %v4996_v5  ;;  %4482 = vst [vmem:[%s472_s1 + $0x8] sm:$0xff] %v4476_v7 }
 0x514   : > { %4479 = vst [vmem:[%s465_s30] sm:$0xff] %v4997_v0  ;;  %4481 = vst [vmem:[%s472_s1] sm:$0xff] %v4473_v10  ;;  %v3977_v42 = vpop.f32.mrb[4].mxu0 }
 0x515   : > { %v4998_v6 = vadd.f32 %v3977_v42, %v6167_v44  ;;  %v3979_v11 = vpop.f32.mrb[5].mxu0 }
 0x516   : > { %v4999_v43 = vadd.f32 %v3979_v11, %v6169_v45 }
 0x517   : > { %4478 = vst [vmem:[%s458_s24 + $0x8] sm:$0xff] %v4998_v6 }
 0x518   : > { %4480 = vst [vmem:[%s465_s30 + $0x8] sm:$0xff] %v4999_v43 }
 0x519   : > { %5389 = shalt.err (!%p5386_p6)
}
 0x51a   : > { %s5390_s0 = scalar_lea.hbm %s6353_s21, 256  ;;  %s5394_s8 = scalar_lea.hbm %s6592_s28, 1024 }
 0x51b   : > { %p5391_p2 = scmp.ne.s32.totalorder %s6353_s21, %s5390_s0  ;;  %p5395_p0 = scmp.lt.u32.totalorder %s6353_s21, %s6592_s28 }
 0x51c   : > { %p5396_p12 = scmp.lt.u32.totalorder %s5394_s8, %s5390_s0  ;;  %p5398_p9 = scmp.lt.u32.totalorder %s5390_s0, %s6353_s21 }
 0x51d   : > { %p5392_p4 = pnand %p5391_p2, %p6595_p5 }
 0x51e   : > { %p5397_p13 = por %p5396_p12, %p5395_p0 }
 0x51f   : > { %p5393_p11 = pneg %p5392_p4 }
 0x520   : > { %p5399_p8 = por %p5398_p9, %p5397_p13 }
 0x522   : > { %p5400_p1 = pnand %p5399_p8, %p5393_p11 }
 0x524   : > { %5403 = shalt.err (!%p5400_p1)
}
 0x525   : > { %s5598_s4 = smov 128   ;;  %s5599_s1 = smov 256  }
 0x526   : > { %s5600_s19 = smov 8   ;;  %s6596_s9 = sand.u32 1, %s5724_s23  }
 0x527   : > { %5135 = dma.vmem_to_hbm [thread:$0]  (%p6595_p5), %s6342_s18, 256, %s6353_s21, %s4484_s27, %s5598_s4, %s5599_s1, %s5600_s19  }
 0x528   : > { %s6397_s0 = scalar_lea.sflag [#allocation10], %s6596_s9  ;;  %s5404_s24 = scalar_lea.vmem %s6347_s17, 256 }
 0x529   : > { %p5405_p3 = scmp.ne.s32.totalorder %s6347_s17, %s5404_s24  ;;  %s5601_s30 = smov [#allocation9]  }
 0x52a   : > { %s5408_s8 = sshll.u32 %s5601_s30, 4  ;;  %s5409_s8 = int_to_ptr.vmem [resolvable:$false] %s5408_s8 }
 0x52b   : > { %p5406_p10 = pnand %p5405_p3, %p6595_p5  ;;  %s5410_s5 = scalar_lea.vmem %s5409_s8, 512 }
 0x52c   : > { %p5411_p6 = scmp.lt.s32.totalorder %s6347_s17, %s5409_s8  ;;  %p5412_p2 = scmp.lt.s32.totalorder %s5410_s5, %s5404_s24 }
 0x52d   : > { %p5407_p7 = pneg %p5406_p10 }
 0x52e   : > { %p5413_p4 = por %p5412_p2, %p5411_p6 }
 0x530   : > { %p5414_p11 = pnand %p5413_p4, %p5407_p7 }
 0x532   : > { %5417 = shalt.err (!%p5414_p11)
}
 0x533   : > { %s5418_s23 = scalar_lea.hbm %s6359_s3, 256  ;;  %s5422_s21 = scalar_lea.hbm %s6593_s29, 1024 }
 0x534   : > { %p5419_p0 = scmp.ne.s32.totalorder %s6359_s3, %s5418_s23  ;;  %p5423_p9 = scmp.lt.u32.totalorder %s6359_s3, %s6593_s29 }
 0x535   : > { %p5424_p8 = scmp.lt.u32.totalorder %s5422_s21, %s5418_s23  ;;  %p5426_p3 = scmp.lt.u32.totalorder %s5418_s23, %s6359_s3 }
 0x536   : > { %p5420_p12 = pnand %p5419_p0, %p6595_p5 }
 0x537   : > { %p5425_p1 = por %p5424_p8, %p5423_p9 }
 0x538   : > { %p5421_p13 = pneg %p5420_p12 }
 0x539   : > { %p5427_p10 = por %p5426_p3, %p5425_p1 }
 0x53b   : > { %p5428_p7 = pnand %p5427_p10, %p5421_p13 }
 0x53d   : > { %5431 = shalt.err (!%p5428_p7)
}
 0x53e   : > { %5136 = dma.vmem_to_hbm [thread:$0]  (%p6595_p5), %s6347_s17, 256, %s6359_s3, %s6397_s0, %s5598_s4, %s5599_s1, %s5600_s19  }
 0x53f   : > { %s5432_s9 = scalar_lea.vmem %s6361_s6, 256  ;;  %s5602_s24 = smov [#allocation11]  }
 0x540   : > { %p5433_p6 = scmp.ne.s32.totalorder %s6361_s6, %s5432_s9  ;;  %s5436_s30 = sshll.u32 %s5602_s24, 4  ;;  %s5437_s30 = int_to_ptr.vmem [resolvable:$false] %s5436_s30 }
 0x541   : > { %s5438_s8 = scalar_lea.vmem %s5437_s30, 512  ;;  %p5439_p11 = scmp.lt.s32.totalorder %s6361_s6, %s5437_s30 }
 0x542   : > { %p5434_p2 = pnand %p5433_p6, %p6595_p5  ;;  %p5440_p0 = scmp.lt.s32.totalorder %s5438_s8, %s5432_s9 }
 0x544   : > { %p5435_p4 = pneg %p5434_p2  ;;  %p5441_p12 = por %p5440_p0, %p5439_p11 }
 0x546   : > { %p5442_p13 = pnand %p5441_p12, %p5435_p4 }
 0x548   : > { %5445 = shalt.err (!%p5442_p13)
}
 0x549   : > { %s5446_s3 = scalar_lea.hbm %s6366_s7, 256  ;;  %s5450_s23 = scalar_lea.hbm %s6594_s2, 1024 }
 0x54a   : > { %p5447_p9 = scmp.ne.s32.totalorder %s6366_s7, %s5446_s3  ;;  %p5451_p3 = scmp.lt.u32.totalorder %s6366_s7, %s6594_s2 }
 0x54b   : > { %p5452_p10 = scmp.lt.u32.totalorder %s5450_s23, %s5446_s3  ;;  %p5454_p6 = scmp.lt.u32.totalorder %s5446_s3, %s6366_s7 }
 0x54c   : > { %p5448_p8 = pnand %p5447_p9, %p6595_p5 }
 0x54d   : > { %p5453_p7 = por %p5452_p10, %p5451_p3 }
 0x54e   : > { %p5449_p1 = pneg %p5448_p8 }
 0x54f   : > { %p5455_p2 = por %p5454_p6, %p5453_p7 }
 0x551   : > { %p5456_p4 = pnand %p5455_p2, %p5449_p1 }
 0x553   : > { %5459 = shalt.err (!%p5456_p4)
}
 0x554   : > { %5137 = dma.vmem_to_hbm [thread:$0]  (%p6595_p5), %s6361_s6, 256, %s6366_s7, %s6397_s0, %s5598_s4, %s5599_s1, %s5600_s19  }
 0x555 PF: > { %p5162_p11 = scmp.ge.s32.totalorder %s5590_s22, 2  ;;  %s4557_s21 = sand.u32 1, %s5562_s15  }
 0x556   : > { %p6597_p0 = scmp.ne.s32.totalorder %s6571_s26, 0  ;;  %s4558_s27 = scalar_lea.sflag [#allocation4], %s4557_s21 }
 0x558   : > { %p5152_p12 = pnand %p5162_p11, %p6597_p0 }
 0x55a   : > { %5529 = dma.done.wait (!%p5152_p12), %s4558_s27, 256  }
 0x55b   : > { %5531 = vsyncadd (!%p5152_p12), %s4558_s27, 4294967040  ;;  %s6598_s12 = sadd.s32 4294967294, %s5590_s22  }
 0x55c   : > { %s4566_s16 = sand.u32 1, %s6598_s12  }
 0x55d   : > { %s4567_s9 = scalar_lea.sflag [#allocation10], %s4566_s16 }
 0x55e   : > { %5533 = dma.done.wait (!%p5152_p12), %s4567_s9, 512  }
 0x55f   : > { %5535 = vsyncadd (!%p5152_p12), %s4567_s9, 4294966784  ;;  %s32_s22 = sadd.s32 1, %s5590_s22   ;;  %s6600_s15 = sld [smem:[#allocation26_spill]] }
 0x560   : > { %p6456_p5 = scmp.ge.s32.totalorder %s32_s22, 6   ;;  %s6601_s26 = sld [smem:[#allocation17_spill]] }
 0x561   : > { %s6602_s16 = sld [smem:[#allocation18_spill]]  ;;  %s6603_s17 = sld [smem:[#allocation27_spill]] }
 0x562   : > { %s6604_s18 = sld [smem:[#allocation21_spill]]  ;;  %s6605_s19 = sld [smem:[#allocation22_spill]] }
 0x563   : > { %s6606_s6 = sld [smem:[#allocation23_spill]]  ;;  %s6607_s21 = sld [smem:[#allocation24_spill]] }
 0x564   : > { %s6608_s30 = smov %s5542_s10  ;;  %s6609_s10 = smov %s5546_s11 }
 0x565   : > { %s6610_s11 = smov %s5906_s20  ;;  %s6611_s12 = smov %s5554_s13 }
 0x566   : > { %s6612_s13 = smov %s5558_s14  ;;  %s6613_s14 = smov %s6600_s15 }
 0x567   : > { %s6614_s15 = smov %s6601_s26  ;;  %31 = sbr.rel (!%p6456_p5) target bundleno = 25 (0x19), region = 149 }
 0x569   : > { %s6615_s20 = smov %s6606_s6 }
 0x56e   :  { %4581 = vsyncpa [#allocation3], 1 }
 0x56f   :  { %4583 = vsyncpa [#allocation3 + $0x1], 1 }
 0x570   :  { %4584 = vsyncpa [#allocation6], 1 }
 0x571   :  { %4586 = vsyncpa [#allocation6 + $0x1], 1 }
 0x572   :  { %4587 = vsyncpa [#allocation4], 1 }
 0x573   :  { %4589 = vsyncpa [#allocation4 + $0x1], 1 }
 0x574   :  { %4590 = vsyncpa [#allocation10], 1 }
 0x575   :  { %4592 = vsyncpa [#allocation10 + $0x1], 1 }

</bundles_post_ra>
